<compile_context>
chip_gen: v7x
topology: tpu7x:2x2x1
jax: 0.10.0
libtpu: 0.0.40
codegen_flags: <defaults>
</compile_context>

<pallas_src>
import functools
import math

import jax
import jax.numpy as jnp
from jax import lax
from jax.experimental import pallas as pl
from jax.experimental.pallas import tpu as pltpu


# Above the 16/32 MiB scoped defaults, comfortably below v7x's 64 MiB physical
# per-TensorCore VMEM (and trivially fine on 128 MiB v5e/v6e).
_VMEM_LIMIT = 40 * 1024 * 1024


def _pick_lane_tile(T, max_tile):
    """Tile for the last (lane) dim.

    Full T when it already fits; otherwise a 128-multiple tile (a divisor of T
    when one exists).  Callers build the grid with pl.cdiv, so a non-dividing
    tile just yields a ragged (cropped) last block instead of one huge full-T
    block that would kill pipelining / blow the VMEM limit.
    """
    max_tile = max(128, max_tile - max_tile % 128)
    if T <= max_tile:
        return T
    if T % 128 == 0:
        for cand in range(max_tile, 127, -128):
            if T % cand == 0:
                return cand
    return max_tile


def _ensure_multi_step(T, tile, batch):
    """Shrink the lane tile (kept a 128-multiple) until the grid has >= 2 steps
    so dimension_semantics=("parallel","parallel") can use both v7x cores."""
    while batch * pl.cdiv(T, tile) < 2 and tile >= 256 and (tile // 2) % 128 == 0:
        tile //= 2
    return tile


# ----------------------------------------------------------------------------
# Fused input projection: kc = [key | content], qd = [query/sqrt(d) | decay]
# ----------------------------------------------------------------------------
def _fused_proj_kernel(x_ref, wkc_ref, bkc_ref, wqd_ref, bqd_ref, kc_ref, qd_ref):
    # x: (1, C, tt) f32; weights already bf16; biases f32.
    xb = x_ref[0].astype(jnp.bfloat16)
    kc = jnp.dot(wkc_ref[...], xb, preferred_element_type=jnp.float32)
    kc_ref[0] = (kc + bkc_ref[...]).astype(kc_ref.dtype)
    qd = jnp.dot(wqd_ref[...], xb, preferred_element_type=jnp.float32)
    qd_ref[0] = (qd + bqd_ref[...]).astype(qd_ref.dtype)


def _fused_projection(x, w_kc, b_kc, w_qd, b_qd):
    B, C, T = x.shape
    Kkc = w_kc.shape[0]
    Kqd = w_qd.shape[0]
    tt = _ensure_multi_step(T, _pick_lane_tile(T, 1024), B)
    grid = (B, pl.cdiv(T, tt))
    return pl.pallas_call(
        _fused_proj_kernel,
        out_shape=(jax.ShapeDtypeStruct((B, Kkc, T), x.dtype),
                   jax.ShapeDtypeStruct((B, Kqd, T), x.dtype)),
        grid_spec=pltpu.PrefetchScalarGridSpec(
            num_scalar_prefetch=0,
            grid=grid,
            in_specs=[
                pl.BlockSpec((1, C, tt), lambda bi, ti: (bi, 0, ti)),
                pl.BlockSpec((Kkc, C), lambda bi, ti: (0, 0)),   # resident weight
                pl.BlockSpec((Kkc, 1), lambda bi, ti: (0, 0)),   # resident bias
                pl.BlockSpec((Kqd, C), lambda bi, ti: (0, 0)),
                pl.BlockSpec((Kqd, 1), lambda bi, ti: (0, 0)),
            ],
            out_specs=(
                pl.BlockSpec((1, Kkc, tt), lambda bi, ti: (bi, 0, ti)),
                pl.BlockSpec((1, Kqd, tt), lambda bi, ti: (bi, 0, ti)),
            ),
        ),
        compiler_params=pltpu.CompilerParams(
            dimension_semantics=("parallel", "parallel"),
            vmem_limit_bytes=_VMEM_LIMIT,
        ),
        cost_estimate=pl.CostEstimate(
            flops=int(2 * B * T * C * (Kkc + Kqd)),
            transcendentals=0,
            bytes_accessed=int(4 * B * C * T + 2 * C * (Kkc + Kqd)
                               + 4 * (Kkc + Kqd) + 4 * B * (Kkc + Kqd) * T),
        ),
    )(x, w_kc, b_kc, w_qd, b_qd)


# ----------------------------------------------------------------------------
# Attention (all heads of one batch per grid step) fused with Wp + residual
# ----------------------------------------------------------------------------
def _attn_proj_kernel(kc_ref, qd_ref, x_ref, wp_ref, bp_ref, o_ref, *,
                      heads, head_dim, ndecay, ndecay_pad, channels):
    C, d, nd, ndp = channels, head_dim, ndecay, ndecay_pad
    T = kc_ref.shape[2]
    ts = o_ref.shape[2]

    # |t - s| and the t == s mask for this query tile (s = si * ts + lane).
    t_idx = lax.broadcasted_iota(jnp.int32, (T, ts), 0)
    s_idx = lax.broadcasted_iota(jnp.int32, (T, ts), 1) + pl.program_id(1) * ts
    diff = t_idx - s_idx
    diag = diff == 0
    delta = jnp.abs(diff).astype(jnp.float32)

    if nd:
        # coef[f] = (f + 1) / (2 * sqrt(nd)); padded decay rows get coef 0.
        f_idx = lax.broadcasted_iota(jnp.int32, (ndp, ts), 0)
        coef = jnp.where(f_idx < nd,
                         (f_idx + 1).astype(jnp.float32) * (0.5 / math.sqrt(nd)),
                         0.0)

    acc = None  # fused output projection accumulator, (C, ts) f32
    for h in range(heads):
        q_h = qd_ref[0, h * d:(h + 1) * d, :].astype(jnp.bfloat16)        # (d, ts)
        k_h = kc_ref[0, h * d:(h + 1) * d, :].astype(jnp.bfloat16)        # (d, T)

        # dots[t, s] = <k[:, t], q[:, s]>   (1/sqrt(d) already folded into q)
        s = lax.dot_general(k_h, q_h, (((0,), (0,)), ((), ())),
                            preferred_element_type=jnp.float32)           # (T, ts)

        if nd:
            dq_h = qd_ref[0, C + h * ndp:C + (h + 1) * ndp, :].astype(jnp.float32)
            dw = jnp.sum(jax.nn.sigmoid(dq_h) * coef, axis=0, keepdims=True)
            s = s - delta * dw

        s = jnp.where(diag, -100.0, s)                 # masked_fill(eye, -100)

        # softmax over keys t (axis 0), numerically stable, f32 on the VPU/EUP
        s = s - jnp.max(s, axis=0, keepdims=True)
        p = jnp.exp(s)
        w = p * pl.reciprocal(jnp.sum(p, axis=0, keepdims=True), approx=True)

        # result_h[c, s] = sum_t content[c, t] * weights[t, s]
        c_h = kc_ref[0, C + h * d:C + (h + 1) * d, :].astype(jnp.bfloat16)  # (d, T)
        r_h = jnp.dot(c_h, w.astype(jnp.bfloat16),
                      preferred_element_type=jnp.float32)                   # (d, ts)

        # fused output projection: acc += Wp[:, h*d:(h+1)*d] @ result_h
        wp_h = wp_ref[h * C:(h + 1) * C, :]                                 # (C, d) bf16
        contrib = jnp.dot(wp_h, r_h.astype(jnp.bfloat16),
                          preferred_element_type=jnp.float32)               # (C, ts)
        acc = contrib if acc is None else acc + contrib

    # residual + bias fused into the epilogue; lane-dense (C, ts) output slab
    o_ref[0] = (acc + bp_ref[...] + x_ref[0]).astype(o_ref.dtype)


def _attention_lane_tile(T):
    # Budget the live (T, ts) f32 score/exp temporaries to ~8 MiB.
    cap = min(512, (8 * 1024 * 1024) // max(1, 4 * 4 * T))
    return _pick_lane_tile(T, cap)


def _attention_project(kc, qd, x, wp, bp, *, heads, ndecay, ndecay_pad, channels):
    B, C, T = x.shape
    d = channels // heads
    Kkc = kc.shape[1]
    Kqd = qd.shape[1]
    ts = _ensure_multi_step(T, _attention_lane_tile(T), B)
    grid = (B, pl.cdiv(T, ts))
    kernel = functools.partial(_attn_proj_kernel, heads=heads, head_dim=d,
                               ndecay=ndecay, ndecay_pad=ndecay_pad,
                               channels=channels)
    return pl.pallas_call(
        kernel,
        out_shape=jax.ShapeDtypeStruct((B, C, T), x.dtype),
        grid_spec=pltpu.PrefetchScalarGridSpec(
            num_scalar_prefetch=0,
            grid=grid,
            in_specs=[
                # keys + content: full T, revisited (resident) across a batch's
                # query tiles.
                pl.BlockSpec((1, Kkc, T), lambda bi, si: (bi, 0, 0)),
                # query + decay tile
                pl.BlockSpec((1, Kqd, ts), lambda bi, si: (bi, 0, si)),
                # residual x tile
                pl.BlockSpec((1, C, ts), lambda bi, si: (bi, 0, si)),
                # output-projection weight (per-head blocks stacked on sublanes)
                pl.BlockSpec((heads * C, d), lambda bi, si: (0, 0)),
                pl.BlockSpec((C, 1), lambda bi, si: (0, 0)),
            ],
            out_specs=pl.BlockSpec((1, C, ts), lambda bi, si: (bi, 0, si)),
        ),
        compiler_params=pltpu.CompilerParams(
            dimension_semantics=("parallel", "parallel"),
            vmem_limit_bytes=_VMEM_LIMIT,
        ),
        cost_estimate=pl.CostEstimate(
            flops=int(4 * B * heads * T * T * d + 2 * B * T * channels * channels),
            transcendentals=int(B * heads * T * T + B * heads * ndecay * T),
            bytes_accessed=int(4 * (B * Kkc * T + B * Kqd * T + 2 * B * C * T)
                               + 2 * heads * C * d + 4 * C),
        ),
    )(kc, qd, x, wp, bp)


# ----------------------------------------------------------------------------
# Module-equivalent forward
# ----------------------------------------------------------------------------
def local_state_forward(x, params, *, heads=4, ndecay=4, nfreqs=0):
    """LocalState.forward: x is (B, C, T); returns (B, C, T)."""
    if nfreqs:
        # TODO(synk): the nfreqs > 0 branch (cosine frequency-kernel attention +
        # concatenated time_sig) is not implemented; the module default nfreqs=0 is.
        raise NotImplementedError("nfreqs > 0 is not supported")

    B, C, T = x.shape
    assert C % heads == 0, (C, heads)
    d = C // heads
    inv_sqrt_d = 1.0 / math.sqrt(d)   # fold dots /= sqrt(d) into the query projection

    # key + content fused weight (used full-T / resident in attention)
    w_kc = jnp.concatenate([params["key_w"], params["content_w"]], 0).astype(jnp.bfloat16)
    b_kc = jnp.concatenate([params["key_b"], params["content_b"]], 0)[:, None].astype(jnp.float32)

    # query (pre-scaled) + per-head decay rows padded to a sublane multiple
    q_w = params["query_w"] * inv_sqrt_d
    q_b = params["query_b"] * inv_sqrt_d
    if ndecay:
        ndp = ((ndecay + 7) // 8) * 8
        dw = params["decay_w"].reshape(heads, ndecay, C)
        dw = jnp.pad(dw, ((0, 0), (0, ndp - ndecay), (0, 0))).reshape(heads * ndp, C)
        db = params["decay_b"].reshape(heads, ndecay)
        db = jnp.pad(db, ((0, 0), (0, ndp - ndecay))).reshape(heads * ndp)
        w_qd = jnp.concatenate([q_w, dw], 0).astype(jnp.bfloat16)
        b_qd = jnp.concatenate([q_b, db], 0)[:, None].astype(jnp.float32)
    else:
        ndp = 0
        w_qd = q_w.astype(jnp.bfloat16)
        b_qd = q_b[:, None].astype(jnp.float32)

    kc, qd = _fused_projection(x, w_kc, b_kc, w_qd, b_qd)

    # Wp rearranged so head h's (C, d) column block sits at rows [h*C, (h+1)*C)
    # -> sublane-aligned per-head slices inside the kernel.
    wp = (params["proj_w"].reshape(C, heads, d).transpose(1, 0, 2)
          .reshape(heads * C, d).astype(jnp.bfloat16))
    bp = params["proj_b"][:, None].astype(jnp.float32)

    return _attention_project(kc, qd, x, wp, bp, heads=heads, ndecay=ndecay,
                              ndecay_pad=ndp, channels=C)


# ----------------------------------------------------------------------------
# Deterministic torch-like parameter construction
# ----------------------------------------------------------------------------
def make_params(channels, heads, ndecay, key):
    ks = jax.random.split(key, 10)

    def conv_init(kw, kb, cout, cin):
        bound = 1.0 / math.sqrt(cin)     # torch Conv1d default (kernel_size=1)
        w = jax.random.uniform(kw, (cout, cin), jnp.float32, -bound, bound)
        b = jax.random.uniform(kb, (cout,), jnp.float32, -bound, bound)
        return w, b

    qw, qb = conv_init(ks[0], ks[1], channels, channels)
    kw_, kb_ = conv_init(ks[2], ks[3], channels, channels)
    cw, cb = conv_init(ks[4], ks[5], channels, channels)
    pw, pb = conv_init(ks[6], ks[7], channels, channels)
    params = {"query_w": qw, "query_b": qb, "key_w": kw_, "key_b": kb_,
              "content_w": cw, "content_b": cb, "proj_w": pw, "proj_b": pb}
    if ndecay:
        dw, _ = conv_init(ks[8], ks[9], heads * ndecay, channels)
        params["decay_w"] = dw * 0.01                                       # weight *= 0.01
        params["decay_b"] = jnp.full((heads * ndecay,), -2.0, jnp.float32)  # bias = -2
    return params


# ----------------------------------------------------------------------------
# Pure-JAX reference (mirrors the PyTorch code line by line)
# ----------------------------------------------------------------------------
def ref_local_state(x, params, *, heads, ndecay):
    B, C, T = x.shape
    d = C // heads
    hp = jax.lax.Precision.HIGHEST

    def conv(w, b, xin):
        return jnp.einsum("oc,bct->bot", w, xin, precision=hp) + b[None, :, None]

    idx = jnp.arange(T, dtype=x.dtype)
    delta = idx[:, None] - idx[None, :]
    queries = conv(params["query_w"], params["query_b"], x).reshape(B, heads, d, T)
    keys = conv(params["key_w"], params["key_b"], x).reshape(B, heads, d, T)
    dots = jnp.einsum("bhct,bhcs->bhts", keys, queries, precision=hp) / math.sqrt(d)
    if ndecay:
        decays = jnp.arange(1, ndecay + 1, dtype=x.dtype)
        decay_q = conv(params["decay_w"], params["decay_b"], x).reshape(B, heads, ndecay, T)
        decay_q = jax.nn.sigmoid(decay_q) / 2
        decay_kernel = -decays[:, None, None] * jnp.abs(delta)[None] / math.sqrt(ndecay)
        dots = dots + jnp.einsum("fts,bhfs->bhts", decay_kernel, decay_q, precision=hp)
    eye = jnp.eye(T, dtype=bool)
    dots = jnp.where(eye[None, None], -100.0, dots)
    weights = jax.nn.softmax(dots, axis=2)
    content = conv(params["content_w"], params["content_b"], x).reshape(B, heads, d, T)
    result = jnp.einsum("bhts,bhct->bhcs", weights, content, precision=hp)
    result = result.reshape(B, C, T)
    return x + conv(params["proj_w"], params["proj_b"], result)


if __name__ == "__main__":
    B, C, T = 2, 32, 128
    heads, ndecay = 4, 4

    root = jax.random.PRNGKey(0)
    k_params, k_x = jax.random.split(root)
    params = make_params(C, heads, ndecay, k_params)
    x = jax.random.normal(k_x, (B, C, T), jnp.float32)

    fwd = jax.jit(functools.partial(local_state_forward, heads=heads, ndecay=ndecay))
    out = jax.block_until_ready(fwd(x, params))
    assert out.shape == (B, C, T), out.shape

    ref = ref_local_state(x, params, heads=heads, ndecay=ndecay)
    max_err = float(jnp.max(jnp.abs(out - ref)))
    # Expected error vs the f32-HIGHEST reference is ~1e-2: bf16 MXU operands
    # (scores / content / output projection) plus the EUP approximate-reciprocal
    # softmax denominator.  3e-2 keeps margin while still being orders of
    # magnitude below the O(1) errors a semantic bug would produce.
    assert max_err < 3e-2, f"max abs err vs reference: {max_err}"

    print("KERNEL_OK")
</pallas_src>

<mosaic_0001>
module attributes {stable_mosaic.version = 11 : i64} {
  func.func @_fused_proj_kernel(%arg0: i32, %arg1: i32, %arg2: memref<1x32x128xf32, #tpu.memory_space<vmem>>, %arg3: memref<64x32xbf16, #tpu.memory_space<vmem>>, %arg4: memref<64x1xf32, #tpu.memory_space<vmem>>, %arg5: memref<64x32xbf16, #tpu.memory_space<vmem>>, %arg6: memref<64x1xf32, #tpu.memory_space<vmem>>, %arg7: memref<1x64x128xf32, #tpu.memory_space<vmem>>, %arg8: memref<1x64x128xf32, #tpu.memory_space<vmem>>) attributes {dimension_semantics = [#tpu.dimension_semantics<parallel>, #tpu.dimension_semantics<parallel>], iteration_bounds = array<i64: 2, 1>, scalar_prefetch = 0 : i64, scratch_operands = 0 : i64, tpu.core_type = #tpu.core_type<tc>, window_params = [{transform_indices = @transform_0, window_bounds = array<i64: 1, 32, 128>}, {pipeline_mode = #tpu.pipeline_mode<synchronous>, transform_indices = @transform_1, window_bounds = array<i64: 64, 32>}, {pipeline_mode = #tpu.pipeline_mode<synchronous>, transform_indices = @transform_2, window_bounds = array<i64: 64, 1>}, {pipeline_mode = #tpu.pipeline_mode<synchronous>, transform_indices = @transform_3, window_bounds = array<i64: 64, 32>}, {pipeline_mode = #tpu.pipeline_mode<synchronous>, transform_indices = @transform_4, window_bounds = array<i64: 64, 1>}, {transform_indices = @transform_5, window_bounds = array<i64: 1, 64, 128>}, {transform_indices = @transform_6, window_bounds = array<i64: 1, 64, 128>}]} {
    %c0 = arith.constant 0 : index
    %c0_0 = arith.constant 0 : index
    %c0_1 = arith.constant 0 : index
    %0 = vector.load %arg2[%c0, %c0_0, %c0_1] : memref<1x32x128xf32, #tpu.memory_space<vmem>>, vector<1x32x128xf32>
    %1 = vector.shape_cast %0 : vector<1x32x128xf32> to vector<32x128xf32>
    %2 = arith.truncf %1 : vector<32x128xf32> to vector<32x128xbf16>
    %c0_2 = arith.constant 0 : index
    %c0_3 = arith.constant 0 : index
    %3 = vector.load %arg3[%c0_2, %c0_3] : memref<64x32xbf16, #tpu.memory_space<vmem>>, vector<64x32xbf16>
    %cst = arith.constant dense<0.000000e+00> : vector<64x128xf32>
    %4 = tpu.matmul %3, %2, %cst {dimension_numbers = #tpu.dot_dimension_numbers<[1], [0], [0], [1], [0, 0, 1, 1], [], []>} : vector<64x32xbf16>, vector<32x128xbf16>, vector<64x128xf32> -> vector<64x128xf32>
    %c0_4 = arith.constant 0 : index
    %c0_5 = arith.constant 0 : index
    %5 = vector.load %arg4[%c0_4, %c0_5] : memref<64x1xf32, #tpu.memory_space<vmem>>, vector<64x1xf32>
    %6 = vector.broadcast %5 : vector<64x1xf32> to vector<64x128xf32>
    %7 = arith.addf %4, %6 : vector<64x128xf32>
    %c0_6 = arith.constant 0 : index
    %c0_7 = arith.constant 0 : index
    %c0_8 = arith.constant 0 : index
    %8 = vector.load %arg7[%c0_6, %c0_7, %c0_8] : memref<1x64x128xf32, #tpu.memory_space<vmem>>, vector<1x64x128xf32>
    %9 = vector.shape_cast %8 : vector<1x64x128xf32> to vector<64x128xf32>
    %10 = vector.shape_cast %7 : vector<64x128xf32> to vector<1x64x128xf32>
    tpu.vector_store %arg7[%c0_6, %c0_7, %c0_8], %10 {strides = array<i32>} : memref<1x64x128xf32, #tpu.memory_space<vmem>>, vector<1x64x128xf32>,
    %c0_9 = arith.constant 0 : index
    %c0_10 = arith.constant 0 : index
    %11 = vector.load %arg5[%c0_9, %c0_10] : memref<64x32xbf16, #tpu.memory_space<vmem>>, vector<64x32xbf16>
    %cst_11 = arith.constant dense<0.000000e+00> : vector<64x128xf32>
    %12 = tpu.matmul %11, %2, %cst_11 {dimension_numbers = #tpu.dot_dimension_numbers<[1], [0], [0], [1], [0, 0, 1, 1], [], []>} : vector<64x32xbf16>, vector<32x128xbf16>, vector<64x128xf32> -> vector<64x128xf32>
    %c0_12 = arith.constant 0 : index
    %c0_13 = arith.constant 0 : index
    %13 = vector.load %arg6[%c0_12, %c0_13] : memref<64x1xf32, #tpu.memory_space<vmem>>, vector<64x1xf32>
    %14 = vector.broadcast %13 : vector<64x1xf32> to vector<64x128xf32>
    %15 = arith.addf %12, %14 : vector<64x128xf32>
    %c0_14 = arith.constant 0 : index
    %c0_15 = arith.constant 0 : index
    %c0_16 = arith.constant 0 : index
    %16 = vector.load %arg8[%c0_14, %c0_15, %c0_16] : memref<1x64x128xf32, #tpu.memory_space<vmem>>, vector<1x64x128xf32>
    %17 = vector.shape_cast %16 : vector<1x64x128xf32> to vector<64x128xf32>
    %18 = vector.shape_cast %15 : vector<64x128xf32> to vector<1x64x128xf32>
    tpu.vector_store %arg8[%c0_14, %c0_15, %c0_16], %18 {strides = array<i32>} : memref<1x64x128xf32, #tpu.memory_space<vmem>>, vector<1x64x128xf32>,
    return
  }
  func.func @transform_0(%arg0: i32, %arg1: i32) -> (i32, i32, i32) {
    %c0_i32 = arith.constant 0 : i32
    %c0_i32_0 = arith.constant 0 : i32
    return %arg0, %c0_i32, %arg1 : i32, i32, i32
  }
  func.func @transform_1(%arg0: i32, %arg1: i32) -> (i32, i32) {
    %c0_i32 = arith.constant 0 : i32
    %c0_i32_0 = arith.constant 0 : i32
    %c0_i32_1 = arith.constant 0 : i32
    return %c0_i32, %c0_i32_0 : i32, i32
  }
  func.func @transform_2(%arg0: i32, %arg1: i32) -> (i32, i32) {
    %c0_i32 = arith.constant 0 : i32
    %c0_i32_0 = arith.constant 0 : i32
    %c0_i32_1 = arith.constant 0 : i32
    return %c0_i32, %c0_i32_0 : i32, i32
  }
  func.func @transform_3(%arg0: i32, %arg1: i32) -> (i32, i32) {
    %c0_i32 = arith.constant 0 : i32
    %c0_i32_0 = arith.constant 0 : i32
    %c0_i32_1 = arith.constant 0 : i32
    return %c0_i32, %c0_i32_0 : i32, i32
  }
  func.func @transform_4(%arg0: i32, %arg1: i32) -> (i32, i32) {
    %c0_i32 = arith.constant 0 : i32
    %c0_i32_0 = arith.constant 0 : i32
    %c0_i32_1 = arith.constant 0 : i32
    return %c0_i32, %c0_i32_0 : i32, i32
  }
  func.func @transform_5(%arg0: i32, %arg1: i32) -> (i32, i32, i32) {
    %c0_i32 = arith.constant 0 : i32
    %c0_i32_0 = arith.constant 0 : i32
    return %arg0, %c0_i32, %arg1 : i32, i32, i32
  }
  func.func @transform_6(%arg0: i32, %arg1: i32) -> (i32, i32, i32) {
    %c0_i32 = arith.constant 0 : i32
    %c0_i32_0 = arith.constant 0 : i32
    return %arg0, %c0_i32, %arg1 : i32, i32, i32
  }
}

module attributes {stable_mosaic.version = 11 : i64} {
  func.func @_attn_proj_kernel(%arg0: i32, %arg1: i32, %arg2: memref<1x64x128xf32, #tpu.memory_space<vmem>>, %arg3: memref<1x64x128xf32, #tpu.memory_space<vmem>>, %arg4: memref<1x32x128xf32, #tpu.memory_space<vmem>>, %arg5: memref<128x8xbf16, #tpu.memory_space<vmem>>, %arg6: memref<32x1xf32, #tpu.memory_space<vmem>>, %arg7: memref<1x32x128xf32, #tpu.memory_space<vmem>>) attributes {dimension_semantics = [#tpu.dimension_semantics<parallel>, #tpu.dimension_semantics<parallel>], iteration_bounds = array<i64: 2, 1>, scalar_prefetch = 0 : i64, scratch_operands = 0 : i64, tpu.core_type = #tpu.core_type<tc>, window_params = [{transform_indices = @transform_0, window_bounds = array<i64: 1, 64, 128>}, {transform_indices = @transform_1, window_bounds = array<i64: 1, 64, 128>}, {transform_indices = @transform_2, window_bounds = array<i64: 1, 32, 128>}, {pipeline_mode = #tpu.pipeline_mode<synchronous>, transform_indices = @transform_3, window_bounds = array<i64: 128, 8>}, {pipeline_mode = #tpu.pipeline_mode<synchronous>, transform_indices = @transform_4, window_bounds = array<i64: 32, 1>}, {transform_indices = @transform_5, window_bounds = array<i64: 1, 32, 128>}]} {
    %0 = tpu.iota {dimensions = array<i32: 0>} : vector<128x128xi32>
    %1 = tpu.iota {dimensions = array<i32: 1>} : vector<128x128xi32>
    %c128_i32 = arith.constant 128 : i32
    %2 = arith.muli %arg1, %c128_i32 : i32
    %3 = vector.broadcast %2 : i32 to vector<128x128xi32>
    %4 = arith.addi %1, %3 : vector<128x128xi32>
    %5 = arith.subi %0, %4 : vector<128x128xi32>
    %c0_i32 = arith.constant 0 : i32
    %6 = vector.broadcast %c0_i32 : i32 to vector<128x128xi32>
    %7 = arith.cmpi eq, %5, %6 : vector<128x128xi32>
    %8 = math.absi %5 : vector<128x128xi32>
    %9 = arith.sitofp %8 : vector<128x128xi32> to vector<128x128xf32>
    %10 = tpu.iota {dimensions = array<i32: 0>} : vector<8x128xi32>
    %c4_i32 = arith.constant 4 : i32
    %11 = vector.broadcast %c4_i32 : i32 to vector<8x128xi32>
    %12 = arith.cmpi slt, %10, %11 : vector<8x128xi32>
    %c1_i32 = arith.constant 1 : i32
    %13 = vector.broadcast %c1_i32 : i32 to vector<8x128xi32>
    %14 = arith.addi %10, %13 : vector<8x128xi32>
    %15 = arith.sitofp %14 : vector<8x128xi32> to vector<8x128xf32>
    %cst = arith.constant 2.500000e-01 : f32
    %16 = vector.broadcast %cst : f32 to vector<8x128xf32>
    %17 = arith.mulf %15, %16 : vector<8x128xf32>
    %cst_0 = arith.constant 0.000000e+00 : f32
    %18 = vector.broadcast %cst_0 : f32 to vector<8x128xf32>
    %19 = arith.select %12, %17, %18 : vector<8x128xi1>, vector<8x128xf32>
    %c0 = arith.constant 0 : index
    %c0_1 = arith.constant 0 : index
    %c0_2 = arith.constant 0 : index
    %20 = vector.load %arg3[%c0, %c0_1, %c0_2] : memref<1x64x128xf32, #tpu.memory_space<vmem>>, vector<1x8x128xf32>
    %21 = vector.shape_cast %20 : vector<1x8x128xf32> to vector<8x128xf32>
    %22 = arith.truncf %21 : vector<8x128xf32> to vector<8x128xbf16>
    %c0_3 = arith.constant 0 : index
    %c0_4 = arith.constant 0 : index
    %c0_5 = arith.constant 0 : index
    %23 = vector.load %arg2[%c0_3, %c0_4, %c0_5] : memref<1x64x128xf32, #tpu.memory_space<vmem>>, vector<1x8x128xf32>
    %24 = vector.shape_cast %23 : vector<1x8x128xf32> to vector<8x128xf32>
    %25 = arith.truncf %24 : vector<8x128xf32> to vector<8x128xbf16>
    %cst_6 = arith.constant dense<0.000000e+00> : vector<128x128xf32>
    %26 = tpu.matmul %25, %22, %cst_6 {dimension_numbers = #tpu.dot_dimension_numbers<[0], [0], [1], [1], [0, 1, 1, 1], [], []>} : vector<8x128xbf16>, vector<8x128xbf16>, vector<128x128xf32> -> vector<128x128xf32>
    %c0_7 = arith.constant 0 : index
    %c32 = arith.constant 32 : index
    %c0_8 = arith.constant 0 : index
    %27 = vector.load %arg3[%c0_7, %c32, %c0_8] : memref<1x64x128xf32, #tpu.memory_space<vmem>>, vector<1x8x128xf32>
    %28 = vector.shape_cast %27 : vector<1x8x128xf32> to vector<8x128xf32>
    %29 = arith.negf %28 : vector<8x128xf32>
    %30 = math.exp %29 : vector<8x128xf32>
    %cst_9 = arith.constant 1.000000e+00 : f32
    %31 = vector.broadcast %cst_9 : f32 to vector<8x128xf32>
    %32 = arith.addf %31, %30 : vector<8x128xf32>
    %33 = arith.divf %31, %32 : vector<8x128xf32>
    %34 = arith.mulf %33, %19 : vector<8x128xf32>
    %cst_10 = arith.constant dense<0.000000e+00> : vector<128xf32>
    %35 = vector.multi_reduction <add>, %34, %cst_10 [0] : vector<8x128xf32> to vector<128xf32>
    %36 = vector.shape_cast %35 : vector<128xf32> to vector<1x128xf32>
    %37 = vector.broadcast %36 : vector<1x128xf32> to vector<128x128xf32>
    %38 = arith.mulf %9, %37 : vector<128x128xf32>
    %39 = arith.subf %26, %38 : vector<128x128xf32>
    %cst_11 = arith.constant -1.000000e+02 : f32
    %40 = vector.broadcast %cst_11 : f32 to vector<128x128xf32>
    %41 = arith.select %7, %40, %39 : vector<128x128xi1>, vector<128x128xf32>
    %cst_12 = arith.constant dense<0xFF800000> : vector<128xf32>
    %42 = vector.multi_reduction <maximumf>, %41, %cst_12 [0] : vector<128x128xf32> to vector<128xf32>
    %43 = vector.shape_cast %42 : vector<128xf32> to vector<1x128xf32>
    %44 = vector.broadcast %43 : vector<1x128xf32> to vector<128x128xf32>
    %45 = arith.subf %41, %44 : vector<128x128xf32>
    %46 = math.exp %45 : vector<128x128xf32>
    %cst_13 = arith.constant dense<0.000000e+00> : vector<128xf32>
    %47 = vector.multi_reduction <add>, %46, %cst_13 [0] : vector<128x128xf32> to vector<128xf32>
    %48 = vector.shape_cast %47 : vector<128xf32> to vector<1x128xf32>
    %49 = tpu.reciprocal %48 {approx = true} : vector<1x128xf32> -> vector<1x128xf32>
    %50 = vector.broadcast %49 : vector<1x128xf32> to vector<128x128xf32>
    %51 = arith.mulf %46, %50 : vector<128x128xf32>
    %c0_14 = arith.constant 0 : index
    %c32_15 = arith.constant 32 : index
    %c0_16 = arith.constant 0 : index
    %52 = vector.load %arg2[%c0_14, %c32_15, %c0_16] : memref<1x64x128xf32, #tpu.memory_space<vmem>>, vector<1x8x128xf32>
    %53 = vector.shape_cast %52 : vector<1x8x128xf32> to vector<8x128xf32>
    %54 = arith.truncf %53 : vector<8x128xf32> to vector<8x128xbf16>
    %55 = arith.truncf %51 : vector<128x128xf32> to vector<128x128xbf16>
    %cst_17 = arith.constant dense<0.000000e+00> : vector<8x128xf32>
    %56 = tpu.matmul %54, %55, %cst_17 {dimension_numbers = #tpu.dot_dimension_numbers<[1], [0], [0], [1], [0, 0, 1, 1], [], []>} : vector<8x128xbf16>, vector<128x128xbf16>, vector<8x128xf32> -> vector<8x128xf32>
    %c0_18 = arith.constant 0 : index
    %c0_19 = arith.constant 0 : index
    %57 = vector.load %arg5[%c0_18, %c0_19] : memref<128x8xbf16, #tpu.memory_space<vmem>>, vector<32x8xbf16>
    %58 = arith.truncf %56 : vector<8x128xf32> to vector<8x128xbf16>
    %cst_20 = arith.constant dense<0.000000e+00> : vector<32x128xf32>
    %59 = tpu.matmul %57, %58, %cst_20 {dimension_numbers = #tpu.dot_dimension_numbers<[1], [0], [0], [1], [0, 0, 1, 1], [], []>} : vector<32x8xbf16>, vector<8x128xbf16>, vector<32x128xf32> -> vector<32x128xf32>
    %c0_21 = arith.constant 0 : index
    %c8 = arith.constant 8 : index
    %c0_22 = arith.constant 0 : index
    %60 = vector.load %arg3[%c0_21, %c8, %c0_22] : memref<1x64x128xf32, #tpu.memory_space<vmem>>, vector<1x8x128xf32>
    %61 = vector.shape_cast %60 : vector<1x8x128xf32> to vector<8x128xf32>
    %62 = arith.truncf %61 : vector<8x128xf32> to vector<8x128xbf16>
    %c0_23 = arith.constant 0 : index
    %c8_24 = arith.constant 8 : index
    %c0_25 = arith.constant 0 : index
    %63 = vector.load %arg2[%c0_23, %c8_24, %c0_25] : memref<1x64x128xf32, #tpu.memory_space<vmem>>, vector<1x8x128xf32>
    %64 = vector.shape_cast %63 : vector<1x8x128xf32> to vector<8x128xf32>
    %65 = arith.truncf %64 : vector<8x128xf32> to vector<8x128xbf16>
    %cst_26 = arith.constant dense<0.000000e+00> : vector<128x128xf32>
    %66 = tpu.matmul %65, %62, %cst_26 {dimension_numbers = #tpu.dot_dimension_numbers<[0], [0], [1], [1], [0, 1, 1, 1], [], []>} : vector<8x128xbf16>, vector<8x128xbf16>, vector<128x128xf32> -> vector<128x128xf32>
    %c0_27 = arith.constant 0 : index
    %c40 = arith.constant 40 : index
    %c0_28 = arith.constant 0 : index
    %67 = vector.load %arg3[%c0_27, %c40, %c0_28] : memref<1x64x128xf32, #tpu.memory_space<vmem>>, vector<1x8x128xf32>
    %68 = vector.shape_cast %67 : vector<1x8x128xf32> to vector<8x128xf32>
    %69 = arith.negf %68 : vector<8x128xf32>
    %70 = math.exp %69 : vector<8x128xf32>
    %cst_29 = arith.constant 1.000000e+00 : f32
    %71 = vector.broadcast %cst_29 : f32 to vector<8x128xf32>
    %72 = arith.addf %71, %70 : vector<8x128xf32>
    %73 = arith.divf %71, %72 : vector<8x128xf32>
    %74 = arith.mulf %73, %19 : vector<8x128xf32>
    %cst_30 = arith.constant dense<0.000000e+00> : vector<128xf32>
    %75 = vector.multi_reduction <add>, %74, %cst_30 [0] : vector<8x128xf32> to vector<128xf32>
    %76 = vector.shape_cast %75 : vector<128xf32> to vector<1x128xf32>
    %77 = vector.broadcast %76 : vector<1x128xf32> to vector<128x128xf32>
    %78 = arith.mulf %9, %77 : vector<128x128xf32>
    %79 = arith.subf %66, %78 : vector<128x128xf32>
    %cst_31 = arith.constant -1.000000e+02 : f32
    %80 = vector.broadcast %cst_31 : f32 to vector<128x128xf32>
    %81 = arith.select %7, %80, %79 : vector<128x128xi1>, vector<128x128xf32>
    %cst_32 = arith.constant dense<0xFF800000> : vector<128xf32>
    %82 = vector.multi_reduction <maximumf>, %81, %cst_32 [0] : vector<128x128xf32> to vector<128xf32>
    %83 = vector.shape_cast %82 : vector<128xf32> to vector<1x128xf32>
    %84 = vector.broadcast %83 : vector<1x128xf32> to vector<128x128xf32>
    %85 = arith.subf %81, %84 : vector<128x128xf32>
    %86 = math.exp %85 : vector<128x128xf32>
    %cst_33 = arith.constant dense<0.000000e+00> : vector<128xf32>
    %87 = vector.multi_reduction <add>, %86, %cst_33 [0] : vector<128x128xf32> to vector<128xf32>
    %88 = vector.shape_cast %87 : vector<128xf32> to vector<1x128xf32>
    %89 = tpu.reciprocal %88 {approx = true} : vector<1x128xf32> -> vector<1x128xf32>
    %90 = vector.broadcast %89 : vector<1x128xf32> to vector<128x128xf32>
    %91 = arith.mulf %86, %90 : vector<128x128xf32>
    %c0_34 = arith.constant 0 : index
    %c40_35 = arith.constant 40 : index
    %c0_36 = arith.constant 0 : index
    %92 = vector.load %arg2[%c0_34, %c40_35, %c0_36] : memref<1x64x128xf32, #tpu.memory_space<vmem>>, vector<1x8x128xf32>
    %93 = vector.shape_cast %92 : vector<1x8x128xf32> to vector<8x128xf32>
    %94 = arith.truncf %93 : vector<8x128xf32> to vector<8x128xbf16>
    %95 = arith.truncf %91 : vector<128x128xf32> to vector<128x128xbf16>
    %cst_37 = arith.constant dense<0.000000e+00> : vector<8x128xf32>
    %96 = tpu.matmul %94, %95, %cst_37 {dimension_numbers = #tpu.dot_dimension_numbers<[1], [0], [0], [1], [0, 0, 1, 1], [], []>} : vector<8x128xbf16>, vector<128x128xbf16>, vector<8x128xf32> -> vector<8x128xf32>
    %c32_38 = arith.constant 32 : index
    %c0_39 = arith.constant 0 : index
    %97 = vector.load %arg5[%c32_38, %c0_39] : memref<128x8xbf16, #tpu.memory_space<vmem>>, vector<32x8xbf16>
    %98 = arith.truncf %96 : vector<8x128xf32> to vector<8x128xbf16>
    %cst_40 = arith.constant dense<0.000000e+00> : vector<32x128xf32>
    %99 = tpu.matmul %97, %98, %cst_40 {dimension_numbers = #tpu.dot_dimension_numbers<[1], [0], [0], [1], [0, 0, 1, 1], [], []>} : vector<32x8xbf16>, vector<8x128xbf16>, vector<32x128xf32> -> vector<32x128xf32>
    %100 = arith.addf %59, %99 : vector<32x128xf32>
    %c0_41 = arith.constant 0 : index
    %c16 = arith.constant 16 : index
    %c0_42 = arith.constant 0 : index
    %101 = vector.load %arg3[%c0_41, %c16, %c0_42] : memref<1x64x128xf32, #tpu.memory_space<vmem>>, vector<1x8x128xf32>
    %102 = vector.shape_cast %101 : vector<1x8x128xf32> to vector<8x128xf32>
    %103 = arith.truncf %102 : vector<8x128xf32> to vector<8x128xbf16>
    %c0_43 = arith.constant 0 : index
    %c16_44 = arith.constant 16 : index
    %c0_45 = arith.constant 0 : index
    %104 = vector.load %arg2[%c0_43, %c16_44, %c0_45] : memref<1x64x128xf32, #tpu.memory_space<vmem>>, vector<1x8x128xf32>
    %105 = vector.shape_cast %104 : vector<1x8x128xf32> to vector<8x128xf32>
    %106 = arith.truncf %105 : vector<8x128xf32> to vector<8x128xbf16>
    %cst_46 = arith.constant dense<0.000000e+00> : vector<128x128xf32>
    %107 = tpu.matmul %106, %103, %cst_46 {dimension_numbers = #tpu.dot_dimension_numbers<[0], [0], [1], [1], [0, 1, 1, 1], [], []>} : vector<8x128xbf16>, vector<8x128xbf16>, vector<128x128xf32> -> vector<128x128xf32>
    %c0_47 = arith.constant 0 : index
    %c48 = arith.constant 48 : index
    %c0_48 = arith.constant 0 : index
    %108 = vector.load %arg3[%c0_47, %c48, %c0_48] : memref<1x64x128xf32, #tpu.memory_space<vmem>>, vector<1x8x128xf32>
    %109 = vector.shape_cast %108 : vector<1x8x128xf32> to vector<8x128xf32>
    %110 = arith.negf %109 : vector<8x128xf32>
    %111 = math.exp %110 : vector<8x128xf32>
    %cst_49 = arith.constant 1.000000e+00 : f32
    %112 = vector.broadcast %cst_49 : f32 to vector<8x128xf32>
    %113 = arith.addf %112, %111 : vector<8x128xf32>
    %114 = arith.divf %112, %113 : vector<8x128xf32>
    %115 = arith.mulf %114, %19 : vector<8x128xf32>
    %cst_50 = arith.constant dense<0.000000e+00> : vector<128xf32>
    %116 = vector.multi_reduction <add>, %115, %cst_50 [0] : vector<8x128xf32> to vector<128xf32>
    %117 = vector.shape_cast %116 : vector<128xf32> to vector<1x128xf32>
    %118 = vector.broadcast %117 : vector<1x128xf32> to vector<128x128xf32>
    %119 = arith.mulf %9, %118 : vector<128x128xf32>
    %120 = arith.subf %107, %119 : vector<128x128xf32>
    %cst_51 = arith.constant -1.000000e+02 : f32
    %121 = vector.broadcast %cst_51 : f32 to vector<128x128xf32>
    %122 = arith.select %7, %121, %120 : vector<128x128xi1>, vector<128x128xf32>
    %cst_52 = arith.constant dense<0xFF800000> : vector<128xf32>
    %123 = vector.multi_reduction <maximumf>, %122, %cst_52 [0] : vector<128x128xf32> to vector<128xf32>
    %124 = vector.shape_cast %123 : vector<128xf32> to vector<1x128xf32>
    %125 = vector.broadcast %124 : vector<1x128xf32> to vector<128x128xf32>
    %126 = arith.subf %122, %125 : vector<128x128xf32>
    %127 = math.exp %126 : vector<128x128xf32>
    %cst_53 = arith.constant dense<0.000000e+00> : vector<128xf32>
    %128 = vector.multi_reduction <add>, %127, %cst_53 [0] : vector<128x128xf32> to vector<128xf32>
    %129 = vector.shape_cast %128 : vector<128xf32> to vector<1x128xf32>
    %130 = tpu.reciprocal %129 {approx = true} : vector<1x128xf32> -> vector<1x128xf32>
    %131 = vector.broadcast %130 : vector<1x128xf32> to vector<128x128xf32>
    %132 = arith.mulf %127, %131 : vector<128x128xf32>
    %c0_54 = arith.constant 0 : index
    %c48_55 = arith.constant 48 : index
    %c0_56 = arith.constant 0 : index
    %133 = vector.load %arg2[%c0_54, %c48_55, %c0_56] : memref<1x64x128xf32, #tpu.memory_space<vmem>>, vector<1x8x128xf32>
    %134 = vector.shape_cast %133 : vector<1x8x128xf32> to vector<8x128xf32>
    %135 = arith.truncf %134 : vector<8x128xf32> to vector<8x128xbf16>
    %136 = arith.truncf %132 : vector<128x128xf32> to vector<128x128xbf16>
    %cst_57 = arith.constant dense<0.000000e+00> : vector<8x128xf32>
    %137 = tpu.matmul %135, %136, %cst_57 {dimension_numbers = #tpu.dot_dimension_numbers<[1], [0], [0], [1], [0, 0, 1, 1], [], []>} : vector<8x128xbf16>, vector<128x128xbf16>, vector<8x128xf32> -> vector<8x128xf32>
    %c64 = arith.constant 64 : index
    %c0_58 = arith.constant 0 : index
    %138 = vector.load %arg5[%c64, %c0_58] : memref<128x8xbf16, #tpu.memory_space<vmem>>, vector<32x8xbf16>
    %139 = arith.truncf %137 : vector<8x128xf32> to vector<8x128xbf16>
    %cst_59 = arith.constant dense<0.000000e+00> : vector<32x128xf32>
    %140 = tpu.matmul %138, %139, %cst_59 {dimension_numbers = #tpu.dot_dimension_numbers<[1], [0], [0], [1], [0, 0, 1, 1], [], []>} : vector<32x8xbf16>, vector<8x128xbf16>, vector<32x128xf32> -> vector<32x128xf32>
    %141 = arith.addf %100, %140 : vector<32x128xf32>
    %c0_60 = arith.constant 0 : index
    %c24 = arith.constant 24 : index
    %c0_61 = arith.constant 0 : index
    %142 = vector.load %arg3[%c0_60, %c24, %c0_61] : memref<1x64x128xf32, #tpu.memory_space<vmem>>, vector<1x8x128xf32>
    %143 = vector.shape_cast %142 : vector<1x8x128xf32> to vector<8x128xf32>
    %144 = arith.truncf %143 : vector<8x128xf32> to vector<8x128xbf16>
    %c0_62 = arith.constant 0 : index
    %c24_63 = arith.constant 24 : index
    %c0_64 = arith.constant 0 : index
    %145 = vector.load %arg2[%c0_62, %c24_63, %c0_64] : memref<1x64x128xf32, #tpu.memory_space<vmem>>, vector<1x8x128xf32>
    %146 = vector.shape_cast %145 : vector<1x8x128xf32> to vector<8x128xf32>
    %147 = arith.truncf %146 : vector<8x128xf32> to vector<8x128xbf16>
    %cst_65 = arith.constant dense<0.000000e+00> : vector<128x128xf32>
    %148 = tpu.matmul %147, %144, %cst_65 {dimension_numbers = #tpu.dot_dimension_numbers<[0], [0], [1], [1], [0, 1, 1, 1], [], []>} : vector<8x128xbf16>, vector<8x128xbf16>, vector<128x128xf32> -> vector<128x128xf32>
    %c0_66 = arith.constant 0 : index
    %c56 = arith.constant 56 : index
    %c0_67 = arith.constant 0 : index
    %149 = vector.load %arg3[%c0_66, %c56, %c0_67] : memref<1x64x128xf32, #tpu.memory_space<vmem>>, vector<1x8x128xf32>
    %150 = vector.shape_cast %149 : vector<1x8x128xf32> to vector<8x128xf32>
    %151 = arith.negf %150 : vector<8x128xf32>
    %152 = math.exp %151 : vector<8x128xf32>
    %cst_68 = arith.constant 1.000000e+00 : f32
    %153 = vector.broadcast %cst_68 : f32 to vector<8x128xf32>
    %154 = arith.addf %153, %152 : vector<8x128xf32>
    %155 = arith.divf %153, %154 : vector<8x128xf32>
    %156 = arith.mulf %155, %19 : vector<8x128xf32>
    %cst_69 = arith.constant dense<0.000000e+00> : vector<128xf32>
    %157 = vector.multi_reduction <add>, %156, %cst_69 [0] : vector<8x128xf32> to vector<128xf32>
    %158 = vector.shape_cast %157 : vector<128xf32> to vector<1x128xf32>
    %159 = vector.broadcast %158 : vector<1x128xf32> to vector<128x128xf32>
    %160 = arith.mulf %9, %159 : vector<128x128xf32>
    %161 = arith.subf %148, %160 : vector<128x128xf32>
    %cst_70 = arith.constant -1.000000e+02 : f32
    %162 = vector.broadcast %cst_70 : f32 to vector<128x128xf32>
    %163 = arith.select %7, %162, %161 : vector<128x128xi1>, vector<128x128xf32>
    %cst_71 = arith.constant dense<0xFF800000> : vector<128xf32>
    %164 = vector.multi_reduction <maximumf>, %163, %cst_71 [0] : vector<128x128xf32> to vector<128xf32>
    %165 = vector.shape_cast %164 : vector<128xf32> to vector<1x128xf32>
    %166 = vector.broadcast %165 : vector<1x128xf32> to vector<128x128xf32>
    %167 = arith.subf %163, %166 : vector<128x128xf32>
    %168 = math.exp %167 : vector<128x128xf32>
    %cst_72 = arith.constant dense<0.000000e+00> : vector<128xf32>
    %169 = vector.multi_reduction <add>, %168, %cst_72 [0] : vector<128x128xf32> to vector<128xf32>
    %170 = vector.shape_cast %169 : vector<128xf32> to vector<1x128xf32>
    %171 = tpu.reciprocal %170 {approx = true} : vector<1x128xf32> -> vector<1x128xf32>
    %172 = vector.broadcast %171 : vector<1x128xf32> to vector<128x128xf32>
    %173 = arith.mulf %168, %172 : vector<128x128xf32>
    %c0_73 = arith.constant 0 : index
    %c56_74 = arith.constant 56 : index
    %c0_75 = arith.constant 0 : index
    %174 = vector.load %arg2[%c0_73, %c56_74, %c0_75] : memref<1x64x128xf32, #tpu.memory_space<vmem>>, vector<1x8x128xf32>
    %175 = vector.shape_cast %174 : vector<1x8x128xf32> to vector<8x128xf32>
    %176 = arith.truncf %175 : vector<8x128xf32> to vector<8x128xbf16>
    %177 = arith.truncf %173 : vector<128x128xf32> to vector<128x128xbf16>
    %cst_76 = arith.constant dense<0.000000e+00> : vector<8x128xf32>
    %178 = tpu.matmul %176, %177, %cst_76 {dimension_numbers = #tpu.dot_dimension_numbers<[1], [0], [0], [1], [0, 0, 1, 1], [], []>} : vector<8x128xbf16>, vector<128x128xbf16>, vector<8x128xf32> -> vector<8x128xf32>
    %c96 = arith.constant 96 : index
    %c0_77 = arith.constant 0 : index
    %179 = vector.load %arg5[%c96, %c0_77] : memref<128x8xbf16, #tpu.memory_space<vmem>>, vector<32x8xbf16>
    %180 = arith.truncf %178 : vector<8x128xf32> to vector<8x128xbf16>
    %cst_78 = arith.constant dense<0.000000e+00> : vector<32x128xf32>
    %181 = tpu.matmul %179, %180, %cst_78 {dimension_numbers = #tpu.dot_dimension_numbers<[1], [0], [0], [1], [0, 0, 1, 1], [], []>} : vector<32x8xbf16>, vector<8x128xbf16>, vector<32x128xf32> -> vector<32x128xf32>
    %182 = arith.addf %141, %181 : vector<32x128xf32>
    %c0_79 = arith.constant 0 : index
    %c0_80 = arith.constant 0 : index
    %183 = vector.load %arg6[%c0_79, %c0_80] : memref<32x1xf32, #tpu.memory_space<vmem>>, vector<32x1xf32>
    %184 = vector.broadcast %183 : vector<32x1xf32> to vector<32x128xf32>
    %185 = arith.addf %182, %184 : vector<32x128xf32>
    %c0_81 = arith.constant 0 : index
    %c0_82 = arith.constant 0 : index
    %c0_83 = arith.constant 0 : index
    %186 = vector.load %arg4[%c0_81, %c0_82, %c0_83] : memref<1x32x128xf32, #tpu.memory_space<vmem>>, vector<1x32x128xf32>
    %187 = vector.shape_cast %186 : vector<1x32x128xf32> to vector<32x128xf32>
    %188 = arith.addf %185, %187 : vector<32x128xf32>
    %c0_84 = arith.constant 0 : index
    %c0_85 = arith.constant 0 : index
    %c0_86 = arith.constant 0 : index
    %189 = vector.load %arg7[%c0_84, %c0_85, %c0_86] : memref<1x32x128xf32, #tpu.memory_space<vmem>>, vector<1x32x128xf32>
    %190 = vector.shape_cast %189 : vector<1x32x128xf32> to vector<32x128xf32>
    %191 = vector.shape_cast %188 : vector<32x128xf32> to vector<1x32x128xf32>
    tpu.vector_store %arg7[%c0_84, %c0_85, %c0_86], %191 {strides = array<i32>} : memref<1x32x128xf32, #tpu.memory_space<vmem>>, vector<1x32x128xf32>,
    return
  }
  func.func @transform_0(%arg0: i32, %arg1: i32) -> (i32, i32, i32) {
    %c0_i32 = arith.constant 0 : i32
    %c0_i32_0 = arith.constant 0 : i32
    %c0_i32_1 = arith.constant 0 : i32
    return %arg0, %c0_i32, %c0_i32_0 : i32, i32, i32
  }
  func.func @transform_1(%arg0: i32, %arg1: i32) -> (i32, i32, i32) {
    %c0_i32 = arith.constant 0 : i32
    %c0_i32_0 = arith.constant 0 : i32
    return %arg0, %c0_i32, %arg1 : i32, i32, i32
  }
  func.func @transform_2(%arg0: i32, %arg1: i32) -> (i32, i32, i32) {
    %c0_i32 = arith.constant 0 : i32
    %c0_i32_0 = arith.constant 0 : i32
    return %arg0, %c0_i32, %arg1 : i32, i32, i32
  }
  func.func @transform_3(%arg0: i32, %arg1: i32) -> (i32, i32) {
    %c0_i32 = arith.constant 0 : i32
    %c0_i32_0 = arith.constant 0 : i32
    %c0_i32_1 = arith.constant 0 : i32
    return %c0_i32, %c0_i32_0 : i32, i32
  }
  func.func @transform_4(%arg0: i32, %arg1: i32) -> (i32, i32) {
    %c0_i32 = arith.constant 0 : i32
    %c0_i32_0 = arith.constant 0 : i32
    %c0_i32_1 = arith.constant 0 : i32
    return %c0_i32, %c0_i32_0 : i32, i32
  }
  func.func @transform_5(%arg0: i32, %arg1: i32) -> (i32, i32, i32) {
    %c0_i32 = arith.constant 0 : i32
    %c0_i32_0 = arith.constant 0 : i32
    return %arg0, %c0_i32, %arg1 : i32, i32, i32
  }
}

</mosaic_0001>

<bundles_post_ra>
// kernel: local_state_forward.2
= control target key start
LH: loop header
LB: loop body
LE: loop exit
PB: predicated region body
PF: predicated region fallthrough
CT: control target
= control target key end

     0   :  { %s927_s21 = smov 0   ;;  %s929_s22 = smov 0   ;;  %s1067_s0 = inlined_call_operand.vmem [shape: f32[2,32,128], index: 0, kind: input, shape index: {}]   ;;  %s1068_s1 = inlined_call_operand.vmem [shape: bf16[64,32], index: 1, kind: input, shape index: {}]   ;;  %s1069_s2 = inlined_call_operand.vmem [shape: f32[64,1], index: 2, kind: input, shape index: {}]   ;;  %s1070_s3 = inlined_call_operand.vmem [shape: bf16[64,32], index: 3, kind: input, shape index: {}]   ;;  %s1071_s4 = inlined_call_operand.vmem [shape: f32[64,1], index: 4, kind: input, shape index: {}]   ;;  %s1072_s5 = inlined_call_operand.vmem [shape: f32[2,64,128], index: 5, kind: output, shape index: {0}]   ;;  %s1073_s6 = inlined_call_operand.vmem [shape: f32[2,64,128], index: 6, kind: output, shape index: {1}]  }
   0x1   :  { %s931_s23 = smov 0  }
   0x2 LB: > { %s29_s24 = sadd.s32 1, %s885_s22  ;;  %p768_p0 = scmp.ge.s32.totalorder %s889_s23, 1  ;;  %s889_s23 = sphi %s931_s23, %s17_s23   ;;  %s885_s22 = sphi %s929_s22, %s1075_s22   ;;  %s881_s21 = sphi %s927_s21, %s1074_s21  }
   0x3   : > { %p31_p1 = scmp.ge.s32.totalorder %s29_s24, 2  ;;  %p236_p2 = scmp.lt.s32.totalorder %s889_s23, 3 }
   0x5   : > { %s1077_s24 = smov (%p31_p1, %s29_s24), 0  ;;  %p237_p3 = pnand %p768_p0, %p236_p2 }
   0x6   : > { %p280_p4 = scmp.lt.s32.totalorder (!%p237_p3), %s881_s21, 1  ;;  %v859_v0 = vld [vmem:[%s1068_s1] sm:$0xff] (!%p237_p3)   ;;  %vm387_vm0 = vcmask (!%p237_p3), 261120   ;;  %v891_v2 = vmov (!%p237_p3), 0   ;;  %v321_v9 = vld [vmem:[%s1069_s2 + $0x10] sm:$0xff] (!%p237_p3)  ;;  %v861_v11 = vld [vmem:[%s1068_s1 + $0x8] sm:$0xff] (!%p237_p3)  }
   0x7   : > { %240 = sbr.rel (%p237_p3) target bundleno = 254 (0xfe), region = 40  ;;  %v860_v1 = vld [vmem:[%s1070_s3] sm:$0xff] (!%p237_p3)   ;;  %812 = vmatprep.mubr.msk.bf16.mxu0 (!%p237_p3), %vm387_vm0, %v859_v0  ;;  %858 = vset.pattern.permute.xlu1 (!%p237_p3), %v891_v2  ;;  %v862_v12 = vld [vmem:[%s1070_s3 + $0x8] sm:$0xff] (!%p237_p3)   ;;  %v322_v13 = vld [vmem:[%s1069_s2 + $0x18] sm:$0xff] (!%p237_p3) }
   0x8   : > { %824 = vmatprep.mubr.msk.bf16.mxu1 (!%p237_p3), %vm387_vm0, %v860_v1  ;;  %857 = vset.pattern.permute.xlu0 (!%p237_p3), %v891_v2  ;;  %v319_v10 = vld [vmem:[%s1069_s2] sm:$0xff] (!%p237_p3)  ;;  %v320_v14 = vld [vmem:[%s1069_s2 + $0x8] sm:$0xff] (!%p237_p3)  ;;  %v863_v15 = vld [vmem:[%s1068_s1 + $0x10] sm:$0xff] (!%p237_p3)  }
   0x9   : > { %339 = vperm.xlu1 (!%p237_p3), %858, %v321_v9   ;;  %329 = vperm.xlu0 (!%p237_p3), %857, %v319_v10   ;;  %v864_v16 = vld [vmem:[%s1070_s3 + $0x10] sm:$0xff] (!%p237_p3)   ;;  %v324_v17 = vld [vmem:[%s1069_s2 + $0x28] sm:$0xff] (!%p237_p3)  ;;  %v323_v18 = vld [vmem:[%s1069_s2 + $0x20] sm:$0xff] (!%p237_p3) }
   0xa   : > { %v865_v19 = vld [vmem:[%s1068_s1 + $0x18] sm:$0xff] (!%p237_p3)   ;;  %v325_v22 = vld [vmem:[%s1069_s2 + $0x30] sm:$0xff] (!%p237_p3)  ;;  %v482_v23 = vld [vmem:[%s1071_s4 + $0x8] sm:$0xff] (!%p237_p3) }
   0xb   : > { %v866_v20 = vld [vmem:[%s1070_s3 + $0x18] sm:$0xff] (!%p237_p3)   ;;  %v481_v24 = vld [vmem:[%s1071_s4] sm:$0xff] (!%p237_p3)  ;;  %v483_v26 = vld [vmem:[%s1071_s4 + $0x10] sm:$0xff] (!%p237_p3) }
   0xc   : > { %v326_v21 = vld [vmem:[%s1069_s2 + $0x38] sm:$0xff] (!%p237_p3)  ;;  %v486_v27 = vld [vmem:[%s1071_s4 + $0x28] sm:$0xff] (!%p237_p3)  ;;  %v485_v28 = vld [vmem:[%s1071_s4 + $0x20] sm:$0xff] (!%p237_p3) }
   0xd   : > { %344 = vperm.xlu1 (!%p237_p3), %858, %v322_v13   ;;  %334 = vperm.xlu0 (!%p237_p3), %857, %v320_v14   ;;  %v484_v25 = vld [vmem:[%s1071_s4 + $0x18] sm:$0xff] (!%p237_p3)  ;;  %v487_v30 = vld [vmem:[%s1071_s4 + $0x30] sm:$0xff] (!%p237_p3) }
   0xe   : > { %s1079_s21 = smov (!%p280_p4, %s881_s21), 1  ;;  %v488_v29 = vld [vmem:[%s1071_s4 + $0x38] sm:$0xff] }
   0xf   : > { %s793_s29 = sshll.u32 %s1079_s21, 5  ;;  %s794_s13 = sshll.u32 %s1079_s21, 6 }
  0x10   : > { %s287_s8 = scalar_lea.vmem %s1067_s0, %s793_s29  ;;  %s1035_s16 = scalar_lea.vmem %s1072_s5, %s794_s13 }
  0x11   : > { %v305_v3 = vld [vmem:[%s287_s8] sm:$0xff]  ;;  %v306_v4 = vld [vmem:[%s287_s8 + $0x8] sm:$0xff]  ;;  %v307_v5 = vld [vmem:[%s287_s8 + $0x10] sm:$0xff]  ;;  %354 = vperm.xlu1 %858, %v324_v17   ;;  %349 = vperm.xlu0 %857, %v323_v18   ;;  %s1040_s19 = scalar_lea.vmem %s1073_s6, %s794_s13 }
  0x12   : > { %v309_v6 = vpack.c.bf16 %v306_v4, %v305_v3  ;;  %v308_v7 = vld [vmem:[%s287_s8 + $0x18] sm:$0xff] }
  0x13   : > { %v310_v8 = vpack.c.bf16 %v308_v7, %v307_v5 }
  0x14   : > { %808 = vmatprep.subr.bf16.mxu0 %v309_v6  ;;  %820 = vmatprep.subr.bf16.mxu1 %v309_v6 }
  0x15   : > { %809 = vmatpush3.bf16.msra.mxu0 %v309_v6  ;;  %821 = vmatpush3.bf16.msra.mxu1 %v309_v6 }
  0x16   : > { %810 = vmatprep.subr.bf16.mxu0 %v310_v8  ;;  %822 = vmatprep.subr.bf16.mxu1 %v310_v8 }
  0x17   : > { %364 = vperm.xlu1 %858, %v326_v21   ;;  %359 = vperm.xlu0 %857, %v325_v22  }
  0x19   : > { %811 = vmatpush3.bf16.msra.mxu0 %v310_v8  ;;  %823 = vmatpush3.bf16.msra.mxu1 %v310_v8 }
  0x1b   : > { %496 = vperm.xlu1 %858, %v482_v23   ;;  %491 = vperm.xlu0 %857, %v481_v24  }
  0x1c   : > { %813 = vmatmul.mubr.msk.bf16.vlgmr.msra.gmra.mrb[0].mxu0 %vm387_vm0, %v861_v11  ;;  %825 = vmatmul.mubr.msk.bf16.vlgmr.msra.gmra.mrb[0].mxu1 %vm387_vm0, %v862_v12 }
  0x1d   : > { %816 = vmatprep.mubr.msk.bf16.mxu0 %vm387_vm0, %v863_v15  ;;  %828 = vmatprep.mubr.msk.bf16.mxu1 %vm387_vm0, %v864_v16 }
  0x1f   : > { %506 = vperm.xlu1 %858, %v484_v25   ;;  %501 = vperm.xlu0 %857, %v483_v26  }
  0x23   : > { %516 = vperm.xlu1 %858, %v486_v27   ;;  %511 = vperm.xlu0 %857, %v485_v28  }
  0x24   : > { %817 = vmatmul.mubr.msk.bf16.gmra.mrb[4].mxu0 %vm387_vm0, %v865_v19  ;;  %829 = vmatmul.mubr.msk.bf16.gmra.mrb[4].mxu1 %vm387_vm0, %v866_v20 }
  0x27   : > { %526 = vperm.xlu1 %858, %v488_v29   ;;  %521 = vperm.xlu0 %857, %v487_v30  }
  0x88   : > { %v340_v31 = vpop.permute.xlu1 %339  ;;  %v330_v32 = vpop.permute.xlu0 %329 }
  0x8c   : > { %v345_v33 = vpop.permute.xlu1 %344  ;;  %v335_v34 = vpop.permute.xlu0 %334 }
  0x90   : > { %v355_v35 = vpop.permute.xlu1 %354  ;;  %v350_v36 = vpop.permute.xlu0 %349 }
  0x96   : > { %v365_v37 = vpop.permute.xlu1 %364  ;;  %v360_v38 = vpop.permute.xlu0 %359 }
  0x9a   : > { %v497_v39 = vpop.permute.xlu1 %496  ;;  %v492_v40 = vpop.permute.xlu0 %491 }
  0x9e   : > { %v507_v41 = vpop.permute.xlu1 %506  ;;  %v502_v42 = vpop.permute.xlu0 %501 }
  0xa2   : > { %v517_v43 = vpop.permute.xlu1 %516  ;;  %v512_v44 = vpop.permute.xlu0 %511 }
  0xa6   : > { %v527_v61 = vpop.permute.xlu1 %526  ;;  %v522_v62 = vpop.permute.xlu0 %521 }
  0xef   : > { %v814_v45 = vpop.f32.mrb[0].mxu0  ;;  %v826_v46 = vpop.f32.mrb[0].mxu1 }
  0xf0   : > { %v443_v47 = vadd.f32 %v814_v45, %v340_v31  ;;  %v604_v48 = vadd.f32 %v826_v46, %v502_v42  ;;  %v434_v49 = vpop.f32.mrb[1].mxu0  ;;  %v595_v50 = vpop.f32.mrb[1].mxu1 }
  0xf1   : > { %v435_v51 = vadd.f32 %v434_v49, %v330_v32  ;;  %v596_v52 = vadd.f32 %v595_v50, %v492_v40  ;;  %v815_v53 = vpop.f32.mrb[2].mxu0  ;;  %v827_v54 = vpop.f32.mrb[2].mxu1 }
  0xf2   : > { %467 = vst [vmem:[%s1035_s16 + $0x10] sm:$0xff] %v443_v47  ;;  %628 = vst [vmem:[%s1040_s19 + $0x10] sm:$0xff] %v604_v48  ;;  %v446_v55 = vadd.f32 %v815_v53, %v345_v33  ;;  %v607_v56 = vadd.f32 %v827_v54, %v507_v41  ;;  %v437_v57 = vpop.f32.mrb[3].mxu0  ;;  %v598_v58 = vpop.f32.mrb[3].mxu1 }
  0xf3   : > { %465 = vst [vmem:[%s1035_s16] sm:$0xff] %v435_v51  ;;  %626 = vst [vmem:[%s1040_s19] sm:$0xff] %v596_v52  ;;  %v438_v59 = vadd.f32 %v437_v57, %v335_v34  ;;  %v599_v60 = vadd.f32 %v598_v58, %v497_v39 }
  0xf4   : > { %468 = vst [vmem:[%s1035_s16 + $0x18] sm:$0xff] %v446_v55  ;;  %629 = vst [vmem:[%s1040_s19 + $0x18] sm:$0xff] %v607_v56 }
  0xf5   : > { %466 = vst [vmem:[%s1035_s16 + $0x8] sm:$0xff] %v438_v59  ;;  %627 = vst [vmem:[%s1040_s19 + $0x8] sm:$0xff] %v599_v60 }
  0xf7   : > { %v818_v63 = vpop.f32.mrb[4].mxu0  ;;  %v830_v0 = vpop.f32.mrb[4].mxu1 }
  0xf8   : > { %v459_v1 = vadd.f32 %v818_v63, %v360_v38  ;;  %v620_v2 = vadd.f32 %v830_v0, %v522_v62  ;;  %v450_v3 = vpop.f32.mrb[5].mxu0  ;;  %v611_v4 = vpop.f32.mrb[5].mxu1 }
  0xf9   : > { %v451_v5 = vadd.f32 %v450_v3, %v350_v36  ;;  %v612_v6 = vadd.f32 %v611_v4, %v512_v44  ;;  %v819_v7 = vpop.f32.mrb[6].mxu0  ;;  %v831_v8 = vpop.f32.mrb[6].mxu1 }
  0xfa   : > { %471 = vst [vmem:[%s1035_s16 + $0x30] sm:$0xff] %v459_v1  ;;  %632 = vst [vmem:[%s1040_s19 + $0x30] sm:$0xff] %v620_v2  ;;  %v462_v9 = vadd.f32 %v819_v7, %v365_v37  ;;  %v623_v10 = vadd.f32 %v831_v8, %v527_v61  ;;  %v453_v11 = vpop.f32.mrb[7].mxu0  ;;  %v614_v12 = vpop.f32.mrb[7].mxu1 }
  0xfb   : > { %469 = vst [vmem:[%s1035_s16 + $0x20] sm:$0xff] %v451_v5  ;;  %630 = vst [vmem:[%s1040_s19 + $0x20] sm:$0xff] %v612_v6  ;;  %v454_v13 = vadd.f32 %v453_v11, %v355_v35  ;;  %v615_v14 = vadd.f32 %v614_v12, %v517_v43 }
  0xfc   : > { %472 = vst [vmem:[%s1035_s16 + $0x38] sm:$0xff] %v462_v9  ;;  %633 = vst [vmem:[%s1040_s19 + $0x38] sm:$0xff] %v623_v10 }
  0xfd   : > { %470 = vst [vmem:[%s1035_s16 + $0x28] sm:$0xff] %v454_v13  ;;  %631 = vst [vmem:[%s1040_s19 + $0x28] sm:$0xff] %v615_v14 }
  0xfe PF: > { %s17_s23 = sadd.s32 1, %s889_s23   ;;  %s1074_s21 = smov %s885_s22 }
  0xff   : > { %p14_p5 = scmp.ge.s32.totalorder %s17_s23, 4   ;;  %s1075_s22 = smov %s1077_s24 }
 0x101   :  { %16 = sbr.rel (!%p14_p5) target bundleno = 2 (0x2), region = 82 }

// kernel: local_state_forward.3
= control target key start
LH: loop header
LB: loop body
LE: loop exit
PB: predicated region body
PF: predicated region fallthrough
CT: control target
= control target key end

     0   :  { %10 = vsyncpa [#allocation3], 0  ;;  %s4144_s0 = inlined_call_operand.vmem [shape: f32[2,64,128], index: 0, kind: input, shape index: {}]   ;;  %s4145_s1 = inlined_call_operand.vmem [shape: f32[2,64,128], index: 1, kind: input, shape index: {}]   ;;  %s4146_s2 = inlined_call_operand.vmem [shape: f32[2,32,128], index: 2, kind: input, shape index: {}]   ;;  %s4147_s3 = inlined_call_operand.vmem [shape: bf16[128,8], index: 3, kind: input, shape index: {}]   ;;  %s4148_s4 = inlined_call_operand.vmem [shape: f32[32,1], index: 4, kind: input, shape index: {}]   ;;  %s4149_s5 = inlined_call_operand.hbm [shape: f32[2,32,128], index: 5, kind: output, shape index: {}]  }
   0x1   :  { %12 = vsyncpa [#allocation3 + $0x1], 0  ;;  %s3047_s18 = smov 0   ;;  %s3049_s19 = smov 0  }
   0x2   :  { %s3051_s20 = smov 0   ;;  %s3053_s21 = smov 0  }
   0x3   :  { %s3055_s22 = smov 0   ;;  %s3057_s23 = smov 0  }
   0x4 LB: > { %s2340_s24 = sadd.s32 4294967295, %s3009_s23   ;;  %s2341_s25 = sadd.s32 4294967294, %s3009_s23   ;;  %s3009_s23 = sphi %s3057_s23, %s18_s23   ;;  %s3005_s22 = sphi %s3055_s22, %s4319_s22   ;;  %s3001_s21 = sphi %s3053_s21, %s4318_s21   ;;  %s2997_s20 = sphi %s3051_s20, %s4317_s20   ;;  %s2993_s19 = sphi %s3049_s19, %s4316_s19   ;;  %s2989_s18 = sphi %s3047_s18, %s4315_s18  }
   0x5   : > { %s30_s26 = sadd.s32 1, %s3005_s22  ;;  %s163_s27 = sadd.s32 1, %s2997_s20 }
   0x6   : > { %p32_p0 = scmp.ge.s32.totalorder %s30_s26, 2  ;;  %p173_p1 = scmp.ne.s32.totalorder %s2997_s20, %s2993_s19 }
   0x7   : > { %p174_p2 = scmp.eq.s32.totalorder %s2340_s24, 1  ;;  %p179_p3 = scmp.ne.s32.totalorder %s2993_s19, %s2989_s18 }
   0x8   : > { %s4321_s26 = smov (%p32_p0, %s30_s26), 0  ;;  %p180_p5 = scmp.eq.s32.totalorder %s2341_s25, 1 }
   0x9   : > { %p3087_p4 = por %p174_p2, %p173_p1  ;;  %s158_s29 = ssub.s32 %s3005_s22, %s4321_s26 }
   0xa   : > { %p2344_p6 = scmp.ge.s32.totalorder %s3009_s23, 1  ;;  %p161_p7 = scmp.eq.s32.totalorder %s158_s29, 0 }
   0xb   : > { %p3094_p8 = por %p180_p5, %p179_p3  ;;  %p234_p9 = scmp.lt.s32.totalorder %s3009_s23, 3 }
   0xc   : > { %s3100_s6 = scalar_select %p161_p7, %s2997_s20, %s163_s27  }
   0xd   : > { %p235_p10 = pnand %p2344_p6, %p234_p9 }
   0xf   : > { %238 = sbr.rel (%p235_p10) target bundleno = 1956 (0x7a4), region = 40 }
  0x16   : > { %p278_p11 = scmp.lt.s32.totalorder %s3001_s21, 1  ;;  %vm4151_vm0 = vcmask 1043456   ;;  %vm4150_vm1 = vcmask 64512   ;;  %v300_v28 = vlaneseq  ;;  %s275_s13 = sand.u32 1, %s2993_s19  }
  0x17   : > { %s2345_s17 = sshll.u32 %s275_s13, 5  ;;  %s3014_s9 = smov [#allocation2]  }
  0x18   : > { %s3104_s7 = scalar_select %p278_p11, %s3001_s21, 1  ;;  %v3142_v30 = vshrl.u32 %v300_v28, 7  ;;  %v3152_v44 = vand.u32 127, %v300_v28 }
  0x19   : > { %s277_s24 = scalar_lea.vmem [#allocation2], %s2345_s17  ;;  %s2935_s10 = sshll.u32 %s3014_s9, 4  ;;  %s2936_s10 = int_to_ptr.vmem [resolvable:$false] %s2935_s10 }
  0x1a   : > { %s2425_s8 = sshll.u32 %s3104_s7, 6  ;;  %v419_v32 = vadd.s32 1, %v3142_v30  ;;  %vm418_vm2 = vcmp.lt.s32.totalorder %v3142_v30, 4  ;;  %v303_v43 = vadd.s32 16, %v3142_v30  ;;  %v304_v46 = vadd.s32 24, %v3142_v30  ;;  %s2427_s12 = sshll.u32 %s3104_s7, 5 }
  0x1b   : > { %s3110_s11 = scalar_lea.vmem %s4144_s0, %s2425_s8  ;;  %s3115_s14 = scalar_lea.vmem %s4145_s1, %s2425_s8  ;;  %v3160_v49 = vsub.s32 %v3142_v30, %v3152_v44  ;;  %v302_v50 = vadd.s32 8, %v3142_v30  ;;  %v307_v52 = vadd.s32 48, %v3142_v30  ;;  %v305_v53 = vadd.s32 32, %v3142_v30 }
  0x1c   : > { %v425_v0 = vld [vmem:[%s3110_s11] sm:$0xff]  ;;  %v793_v5 = vld [vmem:[%s3115_s14 + $0x8] sm:$0xff]  ;;  %v420_v33 = vcvt.s32.f32 %v419_v32  ;;  %v1299_v41 = vld [vmem:[%s3110_s11 + $0x10] sm:$0xff]  ;;  %v3156_v47 = vsub.s32 %v303_v43, %v3152_v44  ;;  %v3164_v51 = vsub.s32 %v304_v46, %v3152_v44  ;;  %v308_v54 = vadd.s32 56, %v3142_v30  ;;  %s298_s16 = scalar_lea.vmem %s4146_s2, %s2427_s12  ;;  %s2232_s25 = sshll.u32 %s277_s24, 4  ;;  %s4089_s25 = int_to_ptr.vmem [resolvable:$true] %s2232_s25 }
  0x1d   : > { %v423_v1 = vld [vmem:[%s3115_s14] sm:$0xff]  ;;  %v426_v2 = vpack.c.bf16 %v425_v0, %v425_v0  ;;  %v794_v6 = vpack.c.bf16 %v793_v5, %v793_v5  ;;  %v795_v8 = vld [vmem:[%s3110_s11 + $0x8] sm:$0xff]  ;;  %v1300_v42 = vpack.c.bf16 %v1299_v41, %v1299_v41  ;;  %v306_v55 = vadd.s32 40, %v3142_v30  ;;  %s2428_s7 = sshll.u32 %s3001_s21, 9  ;;  %s4098_s21 = scalar_lea.sflag [#allocation3], %s275_s13 }
  0x1e   : > { %v424_v3 = vpack.c.bf16 %v423_v1, %v423_v1  ;;  %v796_v9 = vpack.c.bf16 %v795_v8, %v795_v8  ;;  %v569_v26 = vld [vmem:[%s3115_s14 + $0x20] sm:$0xff]  ;;  %v421_v34 = vmul.f32 0.25, %v420_v33  ;;  %v937_v37 = vld [vmem:[%s3115_s14 + $0x28] sm:$0xff]  ;;  %v361_v57 = vsub.s32 0, %v3156_v47  ;;  %s4094_s29 = scalar_lea.hbm %s4149_s5, %s2428_s7  ;;  %s2931_s8 = scalar_lea.vmem %s4089_s25, 512 }
  0x1f   : > { %427 = vxpose.xlu0.c.b16.start.end [1/1] (short) %v426_v2, 128  ;;  %2702 = vmatprep.subr.msk.bf16.mxu0 %vm4151_vm0, %v794_v6  ;;  %v838_v7 = vsel %vm4151_vm0, %v794_v6, 0  ;;  %v2376_v27 = vmul.f32 -1.442695, %v569_v26  ;;  %v2385_v39 = vmul.f32 -1.442695, %v937_v37  ;;  %v355_v59 = vsub.s32 0, %v3160_v49  ;;  %p2932_p12 = scmp.ne.s32.totalorder %s4089_s25, %s2931_s8  ;;  %p2938_p1 = scmp.lt.s32.totalorder %s4089_s25, %s2936_s10 }
  0x20   : > { %2701 = vmatprep.subr.msk.bf16.mxu1 %vm4151_vm0, %v424_v3  ;;  %v470_v4 = vsel %vm4151_vm0, %v424_v3, 0  ;;  %2552 = vmatpush3.bf16.msra.mxu0 %v838_v7  ;;  %v3146_v36 = vsel %vm418_vm2, %v421_v34, 0.0  ;;  %v3173_v60 = vsub.s32 %v302_v50, %v3152_v44  ;;  %v364_v61 = vsub.s32 0, %v3164_v51  ;;  %s2937_s12 = scalar_lea.vmem %s2936_s10, 1024 }
  0x21   : > { %2514 = vmatpush3.bf16.msra.mxu1 %v470_v4  ;;  %2779 = vpow2.f32 %v2376_v27  ;;  %4209 = vst [vmem:[#allocation5_spill] sm:$0xff] %v3146_v36  ;;  %1301 = vxpose.xlu1.c.b16.start.end [1/1] (short) %v1300_v42, 128  ;;  %v3177_v62 = vsub.s32 %v307_v52, %v3152_v44  ;;  %v3180_v63 = vsub.s32 %v305_v53, %v3152_v44  ;;  %v311_v0 = vadd.s32 80, %v3142_v30  ;;  %p2933_p13 = pnand %p2932_p12, %p3087_p4  ;;  %p2939_p2 = scmp.lt.s32.totalorder %s2937_s12, %s2931_s8 }
  0x22   : > { %4210 = vst [vmem:[#allocation6_spill] sm:$0xff] %v3173_v60  ;;  %v309_v1 = vadd.s32 64, %v3142_v30  ;;  %v3185_v2 = vsub.s32 %v308_v54, %v3152_v44  ;;  %v3188_v3 = vsub.s32 %v306_v55, %v3152_v44  ;;  %v2354_v5 = vmin.u32 %v361_v57, %v3156_v47 }
  0x23   : > { %v2352_v7 = vmin.u32 %v355_v59, %v3160_v49  ;;  %v358_v8 = vsub.s32 0, %v3173_v60  ;;  %vm340_vm3 = vcmp.eq.s32.totalorder %v3156_v47, 0  ;;  %v313_v52 = vadd.s32 96, %v3142_v30  ;;  %p2934_p0 = pneg %p2933_p13  ;;  %p2940_p3 = por %p2939_p2, %p2938_p1 }
  0x24   : > { %4211 = vst [vmem:[#allocation7_spill] sm:$0xff] %v3188_v3  ;;  %v316_v53 = vadd.s32 120, %v3142_v30  ;;  %vm338_vm4 = vcmp.eq.s32.totalorder %v3160_v49, 0  ;;  %vm341_vm5 = vcmp.eq.s32.totalorder %v3164_v51, 0  ;;  %vm339_vm6 = vcmp.eq.s32.totalorder %v3173_v60, 0 }
  0x25   : > { %vm344_vm7 = vcmp.eq.s32.totalorder %v3177_v62, 0  ;;  %vm342_vm8 = vcmp.eq.s32.totalorder %v3180_v63, 0  ;;  %vm345_vm9 = vcmp.eq.s32.totalorder %v3185_v2, 0  ;;  %vm343_vm10 = vcmp.eq.s32.totalorder %v3188_v3, 0  ;;  %p2941_p5 = pnand %p2940_p3, %p2934_p0 }
  0x2b   : > { %v2780_v29 = vpop.eup %2779 }
  0x2c   : > { %v573_v31 = vadd.f32 1.0, %v2780_v29 }
  0x2e   : > { %2781 = vrcp.f32 %v573_v31 }
  0x2f   : > { %2783 = vpow2.f32 %v2385_v39 }
  0x38   : > { %v2782_v35 = vpop.eup %2781 }
  0x39   : > { %v576_v38 = vmul.f32 %v2782_v35, %v3146_v36  ;;  %v2784_v56 = vpop.eup %2783 }
  0x3a   : > { %v941_v4 = vadd.f32 1.0, %v2784_v56  ;;  %v314_v56 = vadd.s32 104, %v3142_v30 }
  0x3b   : > { %v577_v40 = vrot.slane %v576_v38, 4 }
  0x3c   : > { %797 = vxpose.xlu0.c.b16.start.end [1/1] (short) %v796_v9, 128  ;;  %v2355_v9 = vmin.u32 %v364_v61, %v3164_v51  ;;  %2785 = vrcp.f32 %v941_v4 }
  0x3d   : > { %v578_v45 = vadd.f32 %v577_v40, %v576_v38 }
  0x3f   : > { %v579_v48 = vrot.slane %v578_v45, 2 }
  0x41   : > { %v580_v58 = vadd.f32 %v579_v48, %v578_v45  ;;  %v315_v45 = vadd.s32 112, %v3142_v30 }
  0x43   : > { %v581_v6 = vrot.slane %v580_v58, 1 }
  0x46   : > { %v2786_v57 = vpop.eup %2785 }
  0x85   : > { %v435_v10 = vpop.trf.xlu0 }
  0x86   : > { %2515 = vmatprep.mubr.msk.bf16.mxu1 %vm4150_vm1, %v435_v10  ;;  %v373_v10 = vsub.s32 0, %v3177_v62 }
  0x89   : > { %v436_v11 = vpop.trf.xlu0 }
  0x8a   : > { %2516 = vmatmul.mubr.msk.bf16.vlgmr.msra.gmra.mrb[0].mxu1 %vm4150_vm1, %v436_v11  ;;  %v367_v11 = vsub.s32 0, %v3180_v63 }
  0x8d   : > { %v437_v12 = vpop.trf.xlu0 }
  0x8e   : > { %2519 = vmatprep.mubr.msk.bf16.mxu1 %vm4150_vm1, %v437_v12  ;;  %v3197_v12 = vsub.s32 %v311_v0, %v3152_v44 }
  0x90   : > { %vm4201_vm11 = vcmp.eq.s32.totalorder %v3197_v12, 0 }
  0x91   : > { %v438_v13 = vpop.trf.xlu0 }
  0x92   : > { %2520 = vmatmul.mubr.msk.bf16.gmra.mrb[4].mxu1 %vm4150_vm1, %v438_v13  ;;  %v3200_v13 = vsub.s32 %v309_v1, %v3152_v44 }
  0x94   : > { %4212 = vst [vmem:[#allocation8_spill] sm:$0xff] %v3200_v13  ;;  %v379_v26 = vsub.s32 0, %v3200_v13  ;;  %vm4195_vm12 = vcmp.eq.s32.totalorder %v3200_v13, 0 }
  0x95   : > { %v439_v14 = vpop.trf.xlu0 }
  0x96   : > { %2523 = vmatprep.mubr.msk.bf16.mxu1 %vm4150_vm1, %v439_v14  ;;  %v312_v14 = vadd.s32 88, %v3142_v30  ;;  %v2360_v41 = vmin.u32 %v379_v26, %v3200_v13 }
  0x98   : > { %v3220_v27 = vsub.s32 %v312_v14, %v3152_v44  ;;  %v3266_v1 = vcvt.s32.f32 %v2360_v41 }
  0x99   : > { %v440_v15 = vpop.trf.xlu0 }
  0x9a   : > { %2524 = vmatmul.mubr.msk.bf16.gmra.mrb[8].mxu1 %vm4150_vm1, %v440_v15  ;;  %v310_v15 = vadd.s32 72, %v3142_v30  ;;  %4216 = vst [vmem:[#allocation12_spill] sm:$0xff] %v3220_v27  ;;  %v388_v42 = vsub.s32 0, %v3220_v27  ;;  %4220 = vst [vmem:[#allocation16_spill] sm:$0xff] %v3266_v1  ;;  %vm4200_vm13 = vcmp.eq.s32.totalorder %v3220_v27, 0 }
  0x9c   : > { %v3223_v28 = vsub.s32 %v310_v15, %v3152_v44  ;;  %v2363_v4 = vmin.u32 %v388_v42, %v3220_v27 }
  0x9d   : > { %v441_v16 = vpop.trf.xlu0 }
  0x9e   : > { %2527 = vmatprep.mubr.msk.bf16.mxu1 %vm4150_vm1, %v441_v16  ;;  %v376_v16 = vsub.s32 0, %v3185_v2  ;;  %4217 = vst [vmem:[#allocation13_spill] sm:$0xff] %v3223_v28  ;;  %v382_v43 = vsub.s32 0, %v3223_v28  ;;  %vm4152_vm14 = vcmp.eq.s32.totalorder %v3223_v28, 0 }
  0xa0   : > { %v2359_v29 = vmin.u32 %v376_v16, %v3185_v2  ;;  %v2361_v30 = vmin.u32 %v382_v43, %v3223_v28 }
  0xa1   : > { %v442_v17 = vpop.trf.xlu0 }
  0xa2   : > { %2528 = vmatmul.mubr.msk.bf16.gmra.mrb[12].mxu1 %vm4150_vm1, %v442_v17  ;;  %v370_v17 = vsub.s32 0, %v3188_v3  ;;  %v3247_v48 = vcvt.s32.f32 %v2359_v29 }
  0xa4   : > { %v2357_v31 = vmin.u32 %v370_v17, %v3188_v3 }
  0xa5   : > { %v805_v18 = vpop.trf.xlu0 }
  0xa6   : > { %2553 = vmatprep.mubr.msk.bf16.mxu0 %vm4150_vm1, %v805_v18  ;;  %v3206_v18 = vcvt.s32.f32 %v2354_v5  ;;  %v3249_v50 = vcvt.s32.f32 %v2357_v31  ;;  %v3271_v5 = vsub.s32 %v315_v45, %v3152_v44 }
  0xa8   : > { %4213 = vst [vmem:[#allocation9_spill] sm:$0xff] %v3206_v18  ;;  %4221 = vst [vmem:[#allocation17_spill] sm:$0xff] %v3271_v5  ;;  %vm4199_vm15 = vcmp.eq.s32.totalorder %v3271_v5, 0 }
  0xa9   : > { %v806_v19 = vpop.trf.xlu0 }
  0xaa   : > { %2554 = vmatmul.mubr.msk.bf16.vlgmr.msra.gmra.mrb[0].mxu0 %vm4150_vm1, %v806_v19  ;;  %v3208_v19 = vadd.f32 %v581_v6, %v580_v58 }
  0xac   : > { %v585_v32 = vmul.f32 %v3208_v19, %v3206_v18  ;;  %v590_v6 = vmul.f32 %v3208_v19, %v3247_v48 }
  0xad   : > { %v807_v20 = vpop.trf.xlu0 }
  0xae   : > { %2557 = vmatprep.mubr.msk.bf16.mxu0 %vm4150_vm1, %v807_v20  ;;  %v3210_v20 = vcvt.s32.f32 %v2352_v7  ;;  %v588_v7 = vmul.f32 %v3208_v19, %v3249_v50 }
  0xb0   : > { %4214 = vst [vmem:[#allocation10_spill] sm:$0xff] %v3210_v20  ;;  %v583_v33 = vmul.f32 %v3208_v19, %v3210_v20 }
  0xb1   : > { %v808_v21 = vpop.trf.xlu0 }
  0xb2   : > { %2558 = vmatmul.mubr.msk.bf16.gmra.mrb[4].mxu0 %vm4150_vm1, %v808_v21  ;;  %v2353_v21 = vmin.u32 %v358_v8, %v3173_v60  ;;  %v3278_v8 = vsub.s32 %v313_v52, %v3152_v44 }
  0xb4   : > { %v3231_v34 = vcvt.s32.f32 %v2353_v21  ;;  %4222 = vst [vmem:[#allocation18_spill] sm:$0xff] %v3278_v8  ;;  %v591_v21 = vmul.f32 %v3208_v19, %v3266_v1  ;;  %v391_v31 = vsub.s32 0, %v3278_v8  ;;  %vm4198_vm2 = vcmp.eq.s32.totalorder %v3278_v8, 0 }
  0xb5   : > { %v809_v22 = vpop.trf.xlu0 }
  0xb6   : > { %2561 = vmatprep.mubr.msk.bf16.mxu0 %vm4150_vm1, %v809_v22  ;;  %v3213_v22 = vcvt.s32.f32 %v2355_v9  ;;  %4218 = vst [vmem:[#allocation14_spill] sm:$0xff] %v3231_v34  ;;  %v584_v55 = vmul.f32 %v3208_v19, %v3231_v34  ;;  %v3281_v9 = vsub.s32 %v316_v53, %v3152_v44 }
  0xb8   : > { %4215 = vst [vmem:[#allocation11_spill] sm:$0xff] %v3213_v22  ;;  %v3235_v35 = vmul.f32 %v3208_v19, %v3213_v22  ;;  %4223 = vst [vmem:[#allocation19_spill] sm:$0xff] %v3281_v9  ;;  %vm4197_vm0 = vcmp.eq.s32.totalorder %v3281_v9, 0 }
  0xb9   : > { %v810_v23 = vpop.trf.xlu0 }
  0xba   : > { %2562 = vmatmul.mubr.msk.bf16.gmra.mrb[8].mxu0 %vm4150_vm1, %v810_v23  ;;  %v2358_v23 = vmin.u32 %v373_v10, %v3177_v62  ;;  %v3286_v10 = vsub.s32 %v314_v56, %v3152_v44  ;;  %v397_v44 = vsub.s32 0, %v3271_v5 }
  0xbc   : > { %v3237_v37 = vcvt.s32.f32 %v2358_v23  ;;  %4224 = vst [vmem:[#allocation20_spill] sm:$0xff] %v3286_v10  ;;  %v3294_v23 = vcvt.s32.f32 %v2363_v4  ;;  %v394_v41 = vsub.s32 0, %v3286_v10 }
  0xbd   : > { %v811_v24 = vpop.trf.xlu0 }
  0xbe   : > { %2565 = vmatprep.mubr.msk.bf16.mxu0 %vm4150_vm1, %v811_v24  ;;  %v2356_v24 = vmin.u32 %v367_v11, %v3180_v63  ;;  %4219 = vst [vmem:[#allocation15_spill] sm:$0xff] %v3237_v37  ;;  %v589_v59 = vmul.f32 %v3208_v19, %v3237_v37  ;;  %v944_v11 = vmul.f32 %v2786_v57, %v3146_v36 }
  0xc0   : > { %v3239_v38 = vcvt.s32.f32 %v2356_v24  ;;  %v3296_v24 = vcvt.s32.f32 %v2361_v30  ;;  %v945_v42 = vrot.slane %v944_v11, 4 }
  0xc1   : > { %v812_v25 = vpop.trf.xlu0 }
  0xc2   : > { %2566 = vmatmul.mubr.msk.bf16.gmra.mrb[12].mxu0 %vm4150_vm1, %v812_v25  ;;  %v385_v25 = vsub.s32 0, %v3197_v12  ;;  %v587_v61 = vmul.f32 %v3208_v19, %v3239_v38  ;;  %vm3012_vm1 = vmmov 0  }
  0xc4   : > { %v2362_v39 = vmin.u32 %v385_v25, %v3197_v12 }
  0xc6   : > { %v3264_v0 = vcvt.s32.f32 %v2362_v39 }
  0xc8   : > { %v593_v16 = vmul.f32 %v3208_v19, %v3264_v0 }
 0x15d   : > { %v2517_v40 = vpop.f32.mrb[0].mxu1 }
 0x15e   : > { %v506_v46 = vpop.f32.mrb[1].mxu1  ;;  %v601_v14 = vsub.f32 %v2517_v40, %v585_v32  ;;  %v400_v32 = vsub.s32 0, %v3281_v9 }
 0x15f   : > { %v2518_v54 = vpop.f32.mrb[2].mxu1  ;;  %v599_v15 = vsub.f32 %v506_v46, %v583_v33 }
 0x160   : > { %v509_v58 = vpop.f32.mrb[3].mxu1  ;;  %v602_v25 = vsub.f32 %v2518_v54, %v3235_v35  ;;  %v3305_v43 = vsel %vm340_vm3, -100.0, %v601_v14 }
 0x161   : > { %v600_v33 = vsub.f32 %v509_v58, %v584_v55  ;;  %v3309_v45 = vsel %vm338_vm4, -100.0, %v599_v15  ;;  %v594_v15 = vmul.f32 %v3208_v19, %v3294_v23 }
 0x162   : > { %v3323_v56 = vsel %vm341_vm5, -100.0, %v602_v25 }
 0x163   : > { %v3335_v4 = vsel %vm339_vm6, -100.0, %v600_v33 }
 0x165   : > { %v2521_v17 = vpop.f32.mrb[4].mxu1 }
 0x166   : > { %v605_v26 = vsub.f32 %v2521_v17, %v589_v59  ;;  %v522_v29 = vpop.f32.mrb[5].mxu1  ;;  %v2366_v59 = vmin.u32 %v397_v44, %v3271_v5  ;;  %v2367_v17 = vmin.u32 %v400_v32, %v3281_v9  ;;  %v946_v44 = vadd.f32 %v945_v42, %v944_v11 }
 0x167   : > { %v603_v39 = vsub.f32 %v522_v29, %v587_v61  ;;  %v2522_v40 = vpop.f32.mrb[6].mxu1  ;;  %v4153_v61 = vmov 0.0   ;;  %v2365_v29 = vmin.u32 %v394_v41, %v3286_v10 }
 0x168   : > { %v3313_v35 = vsel %vm344_vm7, -100.0, %v605_v26  ;;  %v606_v46 = vsub.f32 %v2522_v40, %v590_v6  ;;  %v525_v52 = vpop.f32.mrb[7].mxu1  ;;  %2531 = vmatprep.subr.bf16.mxu1 %v4153_v61  ;;  %v592_v26 = vmul.f32 %v3208_v19, %v3296_v24  ;;  %2547 = vmatprep.mubr.msk.bf16.mxu1 %vm3012_vm1, %v4153_v61 }
 0x169   : > { %v633_v53 = vmax.f32 %v3305_v43, %v3313_v35  ;;  %v3319_v54 = vsel %vm342_vm8, -100.0, %v603_v39  ;;  %v604_v55 = vsub.f32 %v525_v52, %v588_v7  ;;  %v2364_v7 = vmin.u32 %v391_v31, %v3278_v8 }
 0x16a   : > { %v631_v57 = vmax.f32 %v3309_v45, %v3319_v54  ;;  %v3329_v58 = vsel %vm345_vm9, -100.0, %v606_v46  ;;  %v3354_v39 = vcvt.s32.f32 %v2366_v59  ;;  %v947_v52 = vrot.slane %v946_v44, 2 }
 0x16b   : > { %v634_v30 = vmax.f32 %v3323_v56, %v3329_v58  ;;  %v3341_v6 = vsel %vm343_vm10, -100.0, %v604_v55  ;;  %v3358_v11 = vcvt.s32.f32 %v2364_v7 }
 0x16c   : > { %v632_v14 = vmax.f32 %v3335_v4, %v3341_v6  ;;  %4225 = vst [vmem:[#allocation21_spill] sm:$0xff] %v3354_v39 }
 0x16d   : > { %v2525_v25 = vpop.f32.mrb[8].mxu1  ;;  %4226 = vst [vmem:[#allocation22_spill] sm:$0xff] %v3358_v11 }
 0x16e   : > { %v609_v33 = vsub.f32 %v2525_v25, %v593_v16  ;;  %v538_v31 = vpop.f32.mrb[9].mxu1  ;;  %v3364_v16 = vcvt.s32.f32 %v2367_v17  ;;  %v3371_v25 = vcvt.s32.f32 %v2365_v29 }
 0x16f   : > { %v607_v40 = vsub.f32 %v538_v31, %v591_v21  ;;  %v2526_v46 = vpop.f32.mrb[10].mxu1  ;;  %v948_v31 = vadd.f32 %v947_v52, %v946_v44 }
 0x170   : > { %v3362_v32 = vsel %vm4201_vm11, -100.0, %v609_v33  ;;  %v610_v42 = vsub.f32 %v2526_v46, %v594_v15  ;;  %v541_v41 = vpop.f32.mrb[11].mxu1  ;;  %4227 = vst [vmem:[#allocation23_spill] sm:$0xff] %v3364_v16  ;;  %4228 = vst [vmem:[#allocation24_spill] sm:$0xff] %v3371_v25  ;;  %v597_v15 = vmul.f32 %v3208_v19, %v3354_v39  ;;  %v596_v46 = vmul.f32 %v3208_v19, %v3371_v25 }
 0x171   : > { %v637_v55 = vmax.f32 %v633_v53, %v3362_v32  ;;  %v3369_v21 = vsel %vm4195_vm12, -100.0, %v607_v40  ;;  %v608_v59 = vsub.f32 %v541_v41, %v592_v26  ;;  %v595_v26 = vmul.f32 %v3208_v19, %v3358_v11 }
 0x172   : > { %v635_v7 = vmax.f32 %v631_v57, %v3369_v21  ;;  %v3376_v33 = vsel %vm4200_vm13, -100.0, %v610_v42  ;;  %v598_v57 = vmul.f32 %v3208_v19, %v3364_v16 }
 0x173   : > { %v638_v17 = vmax.f32 %v634_v30, %v3376_v33  ;;  %v3383_v53 = vsel %vm4152_vm14, -100.0, %v608_v59  ;;  %vm4196_vm14 = vcmp.eq.s32.totalorder %v3286_v10, 0  ;;  %v949_v59 = vrot.slane %v948_v31, 1 }
 0x174   : > { %v636_v29 = vmax.f32 %v632_v14, %v3383_v53 }
 0x175   : > { %v2529_v40 = vpop.f32.mrb[12].mxu1 }
 0x176   : > { %v613_v30 = vsub.f32 %v2529_v40, %v597_v15  ;;  %v554_v42 = vpop.f32.mrb[13].mxu1 }
 0x177   : > { %v611_v41 = vsub.f32 %v554_v42, %v595_v26  ;;  %v2530_v14 = vpop.f32.mrb[14].mxu1 }
 0x178   : > { %v3399_v44 = vsel %vm4199_vm15, -100.0, %v613_v30  ;;  %v614_v52 = vsub.f32 %v2530_v14, %v598_v57  ;;  %v557_v19 = vpop.f32.mrb[15].mxu1 }
 0x179   : > { %v641_v15 = vmax.f32 %v637_v55, %v3399_v44  ;;  %v3405_v40 = vsel %vm4198_vm2, -100.0, %v611_v41  ;;  %v612_v61 = vsub.f32 %v557_v19, %v596_v46  ;;  %v3418_v55 = vadd.f32 %v949_v59, %v948_v31 }
 0x17a   : > { %v639_v26 = vmax.f32 %v635_v7, %v3405_v40  ;;  %v3410_v42 = vsel %vm4197_vm0, -100.0, %v614_v52 }
 0x17b   : > { %v642_v30 = vmax.f32 %v638_v17, %v3410_v42  ;;  %v3415_v57 = vsel %vm4196_vm14, -100.0, %v612_v61  ;;  %v953_v52 = vmul.f32 %v3418_v55, %v3206_v18  ;;  %v951_v17 = vmul.f32 %v3418_v55, %v3210_v20 }
 0x17c   : > { %v640_v14 = vmax.f32 %v636_v29, %v3415_v57  ;;  %v954_v61 = vmul.f32 %v3418_v55, %v3213_v22  ;;  %v957_v29 = vmul.f32 %v3418_v55, %v3237_v37  ;;  %v952_v31 = vmul.f32 %v3418_v55, %v3231_v34 }
 0x17d   : > { %v644_v36 = vmax.f32 %v641_v15, %v642_v30  ;;  %v2555_v41 = vpop.f32.mrb[0].mxu0  ;;  %v958_v15 = vmul.f32 %v3418_v55, %v3247_v48 }
 0x17e   : > { %v643_v8 = vmax.f32 %v639_v26, %v640_v14  ;;  %v874_v46 = vpop.f32.mrb[1].mxu0  ;;  %v969_v59 = vsub.f32 %v2555_v41, %v953_v52  ;;  %v956_v14 = vmul.f32 %v3418_v55, %v3249_v50 }
 0x17f   : > { %v2556_v19 = vpop.f32.mrb[2].mxu0  ;;  %v967_v26 = vsub.f32 %v874_v46, %v951_v17 }
 0x180   : > { %v645_v7 = vmax.f32 %v643_v8, %v644_v36  ;;  %v877_v9 = vpop.f32.mrb[3].mxu0  ;;  %v955_v36 = vmul.f32 %v3418_v55, %v3239_v38  ;;  %v970_v20 = vsub.f32 %v2556_v19, %v954_v61 }
 0x181   : > { %v968_v5 = vsub.f32 %v877_v9, %v952_v31  ;;  %v3446_v52 = vsel %vm338_vm4, -100.0, %v967_v26 }
 0x182   : > { %v646_v10 = vrot.slane %v645_v7, 4  ;;  %v3456_v17 = vsel %vm341_vm5, -100.0, %v970_v20 }
 0x183   : > { %v3466_v61 = vsel %vm339_vm6, -100.0, %v968_v5  ;;  %v959_v5 = vmul.f32 %v3418_v55, %v3266_v1 }
 0x184   : > { %v647_v8 = vmax.f32 %v645_v7, %v646_v10  ;;  %v3438_v10 = vsel %vm340_vm3, -100.0, %v969_v59 }
 0x185   : > { %v2559_v30 = vpop.f32.mrb[4].mxu0 }
 0x186   : > { %v648_v22 = vrot.slane %v647_v8, 2  ;;  %v973_v18 = vsub.f32 %v2559_v30, %v957_v29  ;;  %v890_v37 = vpop.f32.mrb[5].mxu0 }
 0x187   : > { %v971_v28 = vsub.f32 %v890_v37, %v955_v36  ;;  %v2560_v34 = vpop.f32.mrb[6].mxu0 }
 0x188   : > { %v649_v27 = vmax.f32 %v647_v8, %v648_v22  ;;  %v3442_v41 = vsel %vm344_vm7, -100.0, %v973_v18  ;;  %v974_v46 = vsub.f32 %v2560_v34, %v958_v15  ;;  %v893_v7 = vpop.f32.mrb[7].mxu0  ;;  %v961_v8 = vmul.f32 %v3418_v55, %v3264_v0 }
 0x189   : > { %v1001_v9 = vmax.f32 %v3438_v10, %v3442_v41  ;;  %v3452_v22 = vsel %vm342_vm8, -100.0, %v971_v28  ;;  %v972_v37 = vsub.f32 %v893_v7, %v956_v14 }
 0x18a   : > { %v650_v19 = vrot.slane %v649_v27, 1  ;;  %v999_v18 = vmax.f32 %v3446_v52, %v3452_v22  ;;  %v3462_v34 = vsel %vm345_vm9, -100.0, %v974_v46 }
 0x18b   : > { %v1002_v28 = vmax.f32 %v3456_v17, %v3462_v34  ;;  %v3472_v29 = vsel %vm343_vm10, -100.0, %v972_v37 }
 0x18c   : > { %v3474_v20 = vmax.f32 %v649_v27, %v650_v19  ;;  %v1000_v31 = vmax.f32 %v3466_v61, %v3472_v29  ;;  %v965_v19 = vmul.f32 %v3418_v55, %v3354_v39 }
 0x18d   : > { %v2563_v36 = vpop.f32.mrb[8].mxu0 }
 0x18e   : > { %v652_v59 = vsub.f32 %v3309_v45, %v3474_v20  ;;  %v653_v15 = vsub.f32 %v3335_v4, %v3474_v20  ;;  %v654_v27 = vsub.f32 %v3305_v43, %v3474_v20  ;;  %v655_v26 = vsub.f32 %v3323_v56, %v3474_v20  ;;  %v906_v30 = vpop.f32.mrb[9].mxu0 }
 0x18f   : > { %v656_v14 = vsub.f32 %v3319_v54, %v3474_v20  ;;  %v657_v46 = vsub.f32 %v3341_v6, %v3474_v20  ;;  %v658_v7 = vsub.f32 %v3313_v35, %v3474_v20  ;;  %v659_v45 = vsub.f32 %v3329_v58, %v3474_v20  ;;  %v2564_v4 = vpop.f32.mrb[10].mxu0 }
 0x190   : > { %v660_v43 = vsub.f32 %v3369_v21, %v3474_v20  ;;  %v909_v6 = vpop.f32.mrb[11].mxu0  ;;  %v668_v56 = vmul.f32 1.442695, %v652_v59  ;;  %v670_v1 = vmul.f32 1.442695, %v653_v15  ;;  %v977_v37 = vsub.f32 %v2563_v36, %v961_v8 }
 0x191   : > { %v672_v3 = vmul.f32 1.442695, %v654_v27  ;;  %v975_v60 = vsub.f32 %v906_v30, %v959_v5  ;;  %v962_v54 = vmul.f32 %v3418_v55, %v3294_v23  ;;  %v960_v35 = vmul.f32 %v3418_v55, %v3296_v24 }
 0x192   : > { %2787 = vpow2.f32 %v668_v56  ;;  %v674_v58 = vmul.f32 1.442695, %v655_v26  ;;  %v963_v21 = vmul.f32 %v3418_v55, %v3358_v11  ;;  %v966_v59 = vmul.f32 %v3418_v55, %v3364_v16 }
 0x193   : > { %2789 = vpow2.f32 %v670_v1  ;;  %v964_v36 = vmul.f32 %v3418_v55, %v3371_v25  ;;  %v676_v8 = vmul.f32 1.442695, %v656_v14  ;;  %v3528_v5 = vsel %vm4201_vm11, -100.0, %v977_v37  ;;  %v4229_v37 = vld [vmem:[#allocation12_spill] sm:$0xff] }
 0x194   : > { %2791 = vpow2.f32 %v672_v3  ;;  %v3532_v1 = vsel %vm4195_vm12, -100.0, %v975_v60  ;;  %v678_v27 = vmul.f32 1.442695, %v657_v46  ;;  %v1005_v26 = vmax.f32 %v1001_v9, %v3528_v5  ;;  %v4230_v9 = vld [vmem:[#allocation13_spill] sm:$0xff] }
 0x195   : > { %v2567_v15 = vpop.f32.mrb[12].mxu0  ;;  %v1003_v30 = vmax.f32 %v999_v18, %v3532_v1  ;;  %v978_v56 = vsub.f32 %v2564_v4, %v962_v54  ;;  %2793 = vpow2.f32 %v674_v58  ;;  %v976_v55 = vsub.f32 %v909_v6, %v960_v35  ;;  %v4232_v4 = vld [vmem:[#allocation17_spill] sm:$0xff]  ;;  %v4233_v35 = vld [vmem:[#allocation18_spill] sm:$0xff]  ;;  %v4234_v58 = vld [vmem:[#allocation19_spill] sm:$0xff] }
 0x196   : > { %v922_v16 = vpop.f32.mrb[13].mxu0  ;;  %v981_v3 = vsub.f32 %v2567_v15, %v965_v19  ;;  %v680_v11 = vmul.f32 1.442695, %v658_v7  ;;  %2795 = vpow2.f32 %v676_v8  ;;  %vm4231_vm12 = vcmp.eq.s32.totalorder %v4230_v9, 0  ;;  %v4235_v15 = vld [vmem:[#allocation20_spill] sm:$0xff] }
 0x197   : > { %v979_v14 = vsub.f32 %v922_v16, %v963_v21  ;;  %v2568_v25 = vpop.f32.mrb[14].mxu0  ;;  %v3538_v39 = vsel %vm4200_vm13, -100.0, %v978_v56  ;;  %v3543_v18 = vsel %vm4231_vm12, -100.0, %v976_v55  ;;  %v682_v16 = vmul.f32 1.442695, %v659_v45 }
 0x198   : > { %v982_v60 = vsub.f32 %v2568_v25, %v966_v59  ;;  %v925_v13 = vpop.f32.mrb[15].mxu0  ;;  %v1006_v46 = vmax.f32 %v1002_v28, %v3538_v39  ;;  %v3547_v54 = vsel %vm4199_vm15, -100.0, %v981_v3  ;;  %v1004_v7 = vmax.f32 %v1000_v31, %v3543_v18 }
 0x199   : > { %v1009_v6 = vmax.f32 %v1005_v26, %v3547_v54  ;;  %v3553_v25 = vsel %vm4198_vm2, -100.0, %v979_v14  ;;  %2797 = vpow2.f32 %v678_v27  ;;  %v980_v21 = vsub.f32 %v925_v13, %v964_v36 }
 0x19a   : > { %v1007_v28 = vmax.f32 %v1003_v30, %v3553_v25  ;;  %v3558_v19 = vsel %vm4197_vm0, -100.0, %v982_v60  ;;  %2799 = vpow2.f32 %v680_v11  ;;  %v684_v31 = vmul.f32 1.442695, %v660_v43 }
 0x19b   : > { %v1010_v45 = vmax.f32 %v1006_v46, %v3558_v19  ;;  %v3567_v26 = vsel %vm4196_vm14, -100.0, %v980_v21  ;;  %2801 = vpow2.f32 %v682_v16  ;;  %v4236_v13 = vsub.f32 %v3383_v53, %v3474_v20 }
 0x19c   : > { %v3560_v59 = vpop.eup %2787  ;;  %v1008_v56 = vmax.f32 %v1004_v7, %v3567_v26  ;;  %2803 = vpow2.f32 %v684_v31  ;;  %v4237_v14 = vsub.f32 %v3362_v32, %v3474_v20  ;;  %v4238_v53 = vsub.f32 %v3376_v33, %v3474_v20 }
 0x19d   : > { %v3563_v8 = vpop.eup %2789  ;;  %v1012_v30 = vmax.f32 %v1009_v6, %v1010_v45  ;;  %v686_v36 = vmul.f32 1.442695, %v4236_v13  ;;  %v4239_v32 = vsub.f32 %v3405_v40, %v3474_v20  ;;  %v4240_v33 = vsub.f32 %v3415_v57, %v3474_v20 }
 0x19e   : > { %v700_v27 = vadd.f32 %v3563_v8, %v3560_v59  ;;  %v3572_v55 = vpop.eup %2791  ;;  %v1011_v43 = vmax.f32 %v1007_v28, %v1008_v56  ;;  %v688_v60 = vmul.f32 1.442695, %v4237_v14  ;;  %v690_v16 = vmul.f32 1.442695, %v4238_v53 }
 0x19f   : > { %v3578_v3 = vpop.eup %2793  ;;  %2805 = vpow2.f32 %v686_v36  ;;  %v692_v31 = vmul.f32 1.442695, %v4239_v32  ;;  %v694_v13 = vmul.f32 1.442695, %v4240_v33  ;;  %v4241_v40 = vsub.f32 %v3399_v44, %v3474_v20 }
 0x1a0   : > { %v701_v11 = vadd.f32 %v3572_v55, %v700_v27  ;;  %v1013_v7 = vmax.f32 %v1011_v43, %v1012_v30  ;;  %v3584_v6 = vpop.eup %2795  ;;  %2807 = vpow2.f32 %v688_v60  ;;  %v4242_v57 = vsub.f32 %v3410_v42, %v3474_v20 }
 0x1a1   : > { %2809 = vpow2.f32 %v690_v16  ;;  %v696_v14 = vmul.f32 1.442695, %v4241_v40  ;;  %vm4244_vm12 = vcmask 1043456   ;;  %vm4246_vm0 = vcmask 64512  }
 0x1a2   : > { %v702_v46 = vadd.f32 %v3578_v3, %v701_v11  ;;  %v1014_v28 = vrot.slane %v1013_v7, 4  ;;  %2811 = vpow2.f32 %v692_v31  ;;  %v698_v53 = vmul.f32 1.442695, %v4242_v57  ;;  %vm4245_vm14 = vmmov %vm4244_vm12 }
 0x1a3   : > { %v3590_v45 = vpop.eup %2797  ;;  %2813 = vpow2.f32 %v694_v13  ;;  %vm4247_vm2 = vmmov %vm4246_vm0 }
 0x1a4   : > { %v703_v21 = vadd.f32 %v3584_v6, %v702_v46  ;;  %v1015_v30 = vmax.f32 %v1013_v7, %v1014_v28  ;;  %v3596_v56 = vpop.eup %2799  ;;  %2815 = vpow2.f32 %v696_v14  ;;  %vm4248_vm15 = vmmov %vm4246_vm0 }
 0x1a5   : > { %v3602_v43 = vpop.eup %2801  ;;  %2817 = vpow2.f32 %v698_v53  ;;  %vm4249_vm13 = vmmov %vm4246_vm0 }
 0x1a6   : > { %v704_v27 = vadd.f32 %v3590_v45, %v703_v21  ;;  %v1016_v11 = vrot.slane %v1015_v30, 2  ;;  %v3608_v7 = vpop.eup %2803  ;;  %vm4252_vm11 = vmmov %vm4246_vm0 }
 0x1a8   : > { %v705_v36 = vadd.f32 %v3596_v56, %v704_v27  ;;  %v1017_v46 = vmax.f32 %v1015_v30, %v1016_v11 }
 0x1a9   : > { %v3614_v28 = vpop.eup %2805 }
 0x1aa   : > { %v706_v60 = vadd.f32 %v3602_v43, %v705_v36  ;;  %v1018_v21 = vrot.slane %v1017_v46, 1  ;;  %v3619_v31 = vpop.eup %2807 }
 0x1ab   : > { %v3628_v33 = vpop.eup %2809 }
 0x1ac   : > { %v707_v16 = vadd.f32 %v3608_v7, %v706_v60  ;;  %v3617_v44 = vmax.f32 %v1017_v46, %v1018_v21  ;;  %v3645_v14 = vpop.eup %2811 }
 0x1ad   : > { %v3660_v57 = vpop.eup %2813 }
 0x1ae   : > { %v708_v32 = vadd.f32 %v3614_v28, %v707_v16  ;;  %v1020_v30 = vsub.f32 %v3446_v52, %v3617_v44  ;;  %v1021_v42 = vsub.f32 %v3466_v61, %v3617_v44  ;;  %v1022_v20 = vsub.f32 %v3438_v10, %v3617_v44 }
 0x1af   : > { %v1023_v13 = vsub.f32 %v3456_v17, %v3617_v44  ;;  %v1024_v36 = vsub.f32 %v3452_v22, %v3617_v44  ;;  %v1025_v11 = vsub.f32 %v3472_v29, %v3617_v44  ;;  %v1026_v52 = vsub.f32 %v3442_v41, %v3617_v44 }
 0x1b0   : > { %v709_v27 = vadd.f32 %v3619_v31, %v708_v32  ;;  %v1027_v61 = vsub.f32 %v3462_v34, %v3617_v44  ;;  %v1028_v10 = vsub.f32 %v3532_v1, %v3617_v44  ;;  %v1029_v17 = vsub.f32 %v3543_v18, %v3617_v44 }
 0x1b1   : > { %v1030_v22 = vsub.f32 %v3528_v5, %v3617_v44  ;;  %v1031_v29 = vsub.f32 %v3538_v39, %v3617_v44  ;;  %v1032_v41 = vsub.f32 %v3553_v25, %v3617_v44  ;;  %v1033_v34 = vsub.f32 %v3567_v26, %v3617_v44  ;;  %v3663_v25 = vpop.eup %2815 }
 0x1b2   : > { %v710_v40 = vadd.f32 %v3628_v33, %v709_v27  ;;  %v1034_v1 = vsub.f32 %v3547_v54, %v3617_v44  ;;  %v1035_v18 = vsub.f32 %v3558_v19, %v3617_v44  ;;  %v1036_v46 = vmul.f32 1.442695, %v1020_v30  ;;  %v3666_v21 = vpop.eup %2817 }
 0x1b3   : > { %v1038_v5 = vmul.f32 1.442695, %v1021_v42  ;;  %v1040_v53 = vmul.f32 1.442695, %v1022_v20  ;;  %v1042_v26 = vmul.f32 1.442695, %v1023_v13 }
 0x1b4   : > { %v711_v60 = vadd.f32 %v3645_v14, %v710_v40  ;;  %2819 = vpow2.f32 %v1036_v46  ;;  %v1044_v54 = vmul.f32 1.442695, %v1024_v36  ;;  %v1046_v32 = vmul.f32 1.442695, %v1025_v11 }
 0x1b5   : > { %2821 = vpow2.f32 %v1038_v5  ;;  %v1048_v27 = vmul.f32 1.442695, %v1026_v52  ;;  %v1050_v42 = vmul.f32 1.442695, %v1027_v61  ;;  %v1054_v11 = vmul.f32 1.442695, %v1029_v17 }
 0x1b6   : > { %v712_v39 = vadd.f32 %v3660_v57, %v711_v60  ;;  %2823 = vpow2.f32 %v1040_v53  ;;  %v1052_v60 = vmul.f32 1.442695, %v1028_v10  ;;  %v1056_v61 = vmul.f32 1.442695, %v1030_v22 }
 0x1b7   : > { %2825 = vpow2.f32 %v1042_v26  ;;  %v1058_v10 = vmul.f32 1.442695, %v1031_v29  ;;  %v1060_v17 = vmul.f32 1.442695, %v1032_v41  ;;  %v1062_v22 = vmul.f32 1.442695, %v1033_v34 }
 0x1b8   : > { %v713_v16 = vadd.f32 %v3663_v25, %v712_v39  ;;  %2827 = vpow2.f32 %v1044_v54  ;;  %v1066_v29 = vmul.f32 1.442695, %v1035_v18 }
 0x1b9   : > { %2829 = vpow2.f32 %v1046_v32 }
 0x1ba   : > { %v714_v19 = vadd.f32 %v3666_v21, %v713_v16  ;;  %2831 = vpow2.f32 %v1048_v27 }
 0x1bb   : > { %2833 = vpow2.f32 %v1050_v42 }
 0x1bc   : > { %v715_v44 = vrot.slane %v714_v19, 4  ;;  %2835 = vpow2.f32 %v1052_v60 }
 0x1bd   : > { %2837 = vpow2.f32 %v1054_v11 }
 0x1be   : > { %v716_v30 = vadd.f32 %v715_v44, %v714_v19  ;;  %v3669_v20 = vpop.eup %2819 }
 0x1bf   : > { %v3671_v13 = vpop.eup %2821 }
 0x1c0   : > { %v717_v40 = vrot.slane %v716_v30, 2  ;;  %v1068_v36 = vadd.f32 %v3671_v13, %v3669_v20  ;;  %v3675_v5 = vpop.eup %2823 }
 0x1c1   : > { %v3678_v39 = vpop.eup %2825 }
 0x1c2   : > { %v718_v46 = vadd.f32 %v717_v40, %v716_v30  ;;  %v1069_v52 = vadd.f32 %v3675_v5, %v1068_v36  ;;  %v3681_v54 = vpop.eup %2827  ;;  %v1064_v40 = vmul.f32 1.442695, %v1034_v1 }
 0x1c3   : > { %v3684_v32 = vpop.eup %2829 }
 0x1c4   : > { %v719_v53 = vrot.slane %v718_v46, 1  ;;  %v1070_v16 = vadd.f32 %v3678_v39, %v1069_v52  ;;  %v3687_v27 = vpop.eup %2831 }
 0x1c5   : > { %v3690_v42 = vpop.eup %2833 }
 0x1c6   : > { %v720_v26 = vadd.f32 %v719_v53, %v718_v46  ;;  %v1071_v19 = vadd.f32 %v3681_v54, %v1070_v16  ;;  %v3693_v46 = vpop.eup %2835 }
 0x1c7   : > { %v3696_v36 = vpop.eup %2837 }
 0x1c8   : > { %2839 = vrcp.f32 %v720_v26  ;;  %v1072_v44 = vadd.f32 %v3684_v32, %v1071_v19 }
 0x1c9   : > { %2841 = vpow2.f32 %v1056_v61 }
 0x1ca   : > { %2843 = vpow2.f32 %v1058_v10  ;;  %v1073_v30 = vadd.f32 %v3687_v27, %v1072_v44 }
 0x1cb   : > { %2845 = vpow2.f32 %v1060_v17 }
 0x1cc   : > { %v1074_v60 = vadd.f32 %v3690_v42, %v1073_v30  ;;  %2847 = vpow2.f32 %v1062_v22 }
 0x1cd   : > { %2849 = vpow2.f32 %v1064_v40 }
 0x1ce   : > { %v1075_v41 = vadd.f32 %v3693_v46, %v1074_v60  ;;  %2851 = vpow2.f32 %v1066_v29 }
 0x1d0   : > { %v1076_v34 = vadd.f32 %v3696_v36, %v1075_v41 }
 0x1d2   : > { %v2840_v11 = vpop.eup %2839 }
 0x1d3   : > { %v3699_v53 = vpop.eup %2841  ;;  %v722_v52 = vmul.f32 %v2840_v11, %v3560_v59  ;;  %v723_v1 = vmul.f32 %v2840_v11, %v3563_v8  ;;  %v724_v18 = vmul.f32 %v2840_v11, %v3572_v55  ;;  %v725_v61 = vmul.f32 %v2840_v11, %v3578_v3 }
 0x1d4   : > { %v1077_v26 = vadd.f32 %v3699_v53, %v1076_v34  ;;  %v726_v16 = vmul.f32 %v2840_v11, %v3584_v6  ;;  %v727_v10 = vmul.f32 %v2840_v11, %v3590_v45  ;;  %v728_v19 = vmul.f32 %v2840_v11, %v3596_v56  ;;  %v3709_v17 = vpop.eup %2843 }
 0x1d5   : > { %v740_v44 = vpack.c.bf16 %v723_v1, %v722_v52  ;;  %v741_v22 = vpack.c.bf16 %v725_v61, %v724_v18  ;;  %v729_v59 = vmul.f32 %v2840_v11, %v3602_v43  ;;  %v730_v8 = vmul.f32 %v2840_v11, %v3608_v7  ;;  %v3716_v6 = vpop.eup %2845 }
 0x1d6   : > { %v1078_v55 = vadd.f32 %v3709_v17, %v1077_v26  ;;  %v742_v30 = vpack.c.bf16 %v727_v10, %v726_v16  ;;  %v731_v3 = vmul.f32 %v2840_v11, %v3614_v28  ;;  %v732_v40 = vmul.f32 %v2840_v11, %v3619_v31  ;;  %v2848_v31 = vpop.eup %2847 }
 0x1d7   : > { %2532 = vmatpush3.bf16.msra.mxu1 %v740_v44  ;;  %v743_v45 = vpack.c.bf16 %v729_v59, %v728_v19  ;;  %v733_v56 = vmul.f32 %v2840_v11, %v3628_v33  ;;  %v734_v29 = vmul.f32 %v2840_v11, %v3645_v14  ;;  %v735_v60 = vmul.f32 %v2840_v11, %v3660_v57  ;;  %v2850_v26 = vpop.eup %2849  ;;  %v738_v44 = vld [vmem:[%s3110_s11 + $0x20] sm:$0xff] }
 0x1d8   : > { %v1079_v43 = vadd.f32 %v3716_v6, %v1078_v55  ;;  %v4243_v7 = vmov 0.0   ;;  %v744_v41 = vpack.c.bf16 %v731_v3, %v730_v8  ;;  %v736_v34 = vmul.f32 %v2840_v11, %v3663_v25  ;;  %v2852_v33 = vpop.eup %2851 }
 0x1d9   : > { %2533 = vmatprep.subr.bf16.mxu1 %v4243_v7  ;;  %v737_v28 = vmul.f32 %v2840_v11, %v3666_v21  ;;  %v745_v52 = vpack.c.bf16 %v733_v56, %v732_v40  ;;  %v746_v1 = vpack.c.bf16 %v735_v60, %v734_v29 }
 0x1da   : > { %v1080_v18 = vadd.f32 %v2848_v31, %v1079_v43 }
 0x1db   : > { %v747_v61 = vpack.c.bf16 %v737_v28, %v736_v34  ;;  %2534 = vmatpush3.bf16.msra.mxu1 %v741_v22  ;;  %v739_v22 = vpack.c.bf16 %v738_v44, %v738_v44 }
 0x1dc   : > { %v1081_v14 = vadd.f32 %v2850_v26, %v1080_v18  ;;  %2535 = vmatprep.subr.bf16.mxu1 %v4243_v7 }
 0x1de   : > { %v1082_v57 = vadd.f32 %v2852_v33, %v1081_v14 }
 0x1df   : > { %2536 = vmatpush3.bf16.msra.mxu1 %v742_v30 }
 0x1e0   : > { %v1083_v16 = vrot.slane %v1082_v57, 4  ;;  %2537 = vmatprep.subr.bf16.mxu1 %v4243_v7 }
 0x1e2   : > { %v1084_v25 = vadd.f32 %v1083_v16, %v1082_v57 }
 0x1e3   : > { %2538 = vmatpush3.bf16.msra.mxu1 %v743_v45 }
 0x1e4   : > { %v1085_v21 = vrot.slane %v1084_v25, 2  ;;  %2539 = vmatprep.subr.bf16.mxu1 %v4243_v7 }
 0x1e6   : > { %v1086_v11 = vadd.f32 %v1085_v21, %v1084_v25  ;;  %v2771_v21 = vld [vmem:[%s4147_s3 + $0x10] sm:$0xff]  }
 0x1e7   : > { %2540 = vmatpush3.bf16.msra.mxu1 %v744_v41 }
 0x1e8   : > { %v1087_v10 = vrot.slane %v1086_v11, 1  ;;  %2541 = vmatprep.subr.bf16.mxu1 %v4243_v7 }
 0x1ea   : > { %v1088_v19 = vadd.f32 %v1087_v10, %v1086_v11  ;;  %v1441_v11 = vld [vmem:[%s3115_s14 + $0x30] sm:$0xff] }
 0x1eb   : > { %2542 = vmatpush3.bf16.msra.mxu1 %v745_v52  ;;  %v2402_v10 = vmul.f32 -1.442695, %v1441_v11 }
 0x1ec   : > { %2853 = vrcp.f32 %v1088_v19  ;;  %2543 = vmatprep.subr.bf16.mxu1 %v4243_v7 }
 0x1ed   : > { %2855 = vpow2.f32 %v2402_v10 }
 0x1ef   : > { %2544 = vmatpush3.bf16.msra.mxu1 %v746_v1 }
 0x1f0   : > { %2545 = vmatprep.subr.bf16.mxu1 %v4243_v7 }
 0x1f3   : > { %2546 = vmatpush3.bf16.msra.mxu1 %v747_v61 }
 0x1f4   : > { %2569 = vmatprep.subr.bf16.mxu1 %v4243_v7 }
 0x1f6   : > { %v2854_v59 = vpop.eup %2853  ;;  %2548 = vmatmul.mubr.bf16.vlgmr.msra.gmra.mrb[16].mxu1 %v739_v22 }
 0x1f7   : > { %v1090_v8 = vmul.f32 %v2854_v59, %v3669_v20  ;;  %v1091_v55 = vmul.f32 %v2854_v59, %v3671_v13  ;;  %v1092_v30 = vmul.f32 %v2854_v59, %v3675_v5  ;;  %v1093_v3 = vmul.f32 %v2854_v59, %v3678_v39  ;;  %2585 = vmatprep.mubr.msk.bf16.mxu1 %vm3012_vm1, %v4243_v7  ;;  %v2856_v19 = vpop.eup %2855 }
 0x1f8   : > { %v1094_v40 = vmul.f32 %v2854_v59, %v3681_v54  ;;  %v1095_v45 = vmul.f32 %v2854_v59, %v3684_v32  ;;  %v1096_v56 = vmul.f32 %v2854_v59, %v3687_v27  ;;  %v1097_v29 = vmul.f32 %v2854_v59, %v3690_v42 }
 0x1f9   : > { %v1108_v60 = vpack.c.bf16 %v1091_v55, %v1090_v8  ;;  %v1109_v43 = vpack.c.bf16 %v1093_v3, %v1092_v30  ;;  %v1098_v20 = vmul.f32 %v2854_v59, %v3693_v46  ;;  %v1099_v13 = vmul.f32 %v2854_v59, %v3696_v36  ;;  %v4254_v3 = vld [vmem:[#allocation5_spill] sm:$0xff] }
 0x1fa   : > { %v1110_v5 = vpack.c.bf16 %v1095_v45, %v1094_v40  ;;  %v1111_v41 = vpack.c.bf16 %v1097_v29, %v1096_v56  ;;  %v1100_v39 = vmul.f32 %v2854_v59, %v3699_v53  ;;  %v1101_v34 = vmul.f32 %v2854_v59, %v3709_v17  ;;  %v1309_v53 = vpop.trf.xlu1  ;;  %v1297_v17 = vld [vmem:[%s3115_s14 + $0x10] sm:$0xff] }
 0x1fb   : > { %2570 = vmatpush3.bf16.msra.mxu1 %v1108_v60  ;;  %v1112_v54 = vpack.c.bf16 %v1099_v13, %v1098_v20  ;;  %v1102_v32 = vmul.f32 %v2854_v59, %v3716_v6  ;;  %v1103_v28 = vmul.f32 %v2854_v59, %v2848_v31  ;;  %v1104_v27 = vmul.f32 %v2854_v59, %v2850_v26  ;;  %v1106_v31 = vld [vmem:[%s3110_s11 + $0x28] sm:$0xff] }
 0x1fc   : > { %2571 = vmatprep.subr.bf16.mxu1 %v4243_v7  ;;  %v1113_v42 = vpack.c.bf16 %v1101_v34, %v1100_v39  ;;  %v1105_v52 = vmul.f32 %v2854_v59, %v2852_v33  ;;  %v1298_v1 = vpack.c.bf16 %v1297_v17, %v1297_v17  ;;  %v1107_v18 = vpack.c.bf16 %v1106_v31, %v1106_v31 }
 0x1fd   : > { %v1114_v46 = vpack.c.bf16 %v1103_v28, %v1102_v32  ;;  %v1445_v8 = vadd.f32 1.0, %v2856_v19 }
 0x1fe   : > { %v1115_v36 = vpack.c.bf16 %v1105_v52, %v1104_v27  ;;  %v1310_v6 = vpop.trf.xlu1  ;;  %v1342_v61 = vsel %vm4245_vm14, %v1298_v1, 0  ;;  %vm4251_vm14 = vmmov %vm4246_vm0 }
 0x1ff   : > { %2572 = vmatpush3.bf16.msra.mxu1 %v1109_v43  ;;  %2857 = vrcp.f32 %v1445_v8 }
 0x200   : > { %2573 = vmatprep.subr.bf16.mxu1 %v4243_v7 }
 0x202   : > { %v1311_v26 = vpop.trf.xlu1 }
 0x203   : > { %2574 = vmatpush3.bf16.msra.mxu1 %v1110_v5 }
 0x204   : > { %2575 = vmatprep.subr.bf16.mxu1 %v4243_v7 }
 0x206   : > { %v1312_v33 = vpop.trf.xlu1 }
 0x207   : > { %2576 = vmatpush3.bf16.msra.mxu1 %v1111_v41 }
 0x208   : > { %2577 = vmatprep.subr.bf16.mxu1 %v4243_v7 }
 0x209   : > { %v2858_v30 = vpop.eup %2857 }
 0x20a   : > { %v1313_v14 = vpop.trf.xlu1  ;;  %v1448_v40 = vmul.f32 %v2858_v30, %v4254_v3 }
 0x20b   : > { %2578 = vmatpush3.bf16.msra.mxu1 %v1112_v54  ;;  %v2772_v54 = vld [vmem:[%s4147_s3 + $0x18] sm:$0xff]  }
 0x20c   : > { %2579 = vmatprep.subr.bf16.mxu1 %v4243_v7  ;;  %v1449_v45 = vrot.slane %v1448_v40, 4 }
 0x20e   : > { %v1314_v57 = vpop.trf.xlu1  ;;  %v1450_v56 = vadd.f32 %v1449_v45, %v1448_v40 }
 0x20f   : > { %2580 = vmatpush3.bf16.msra.mxu1 %v1113_v42 }
 0x210   : > { %2581 = vmatprep.subr.bf16.mxu1 %v4243_v7  ;;  %v1451_v29 = vrot.slane %v1450_v56, 2 }
 0x212   : > { %v1315_v16 = vpop.trf.xlu1  ;;  %v1452_v60 = vadd.f32 %v1451_v29, %v1450_v56 }
 0x213   : > { %2582 = vmatpush3.bf16.msra.mxu1 %v1114_v46 }
 0x214   : > { %2583 = vmatprep.subr.bf16.mxu1 %v4243_v7  ;;  %v1453_v32 = vrot.slane %v1452_v60, 1 }
 0x216   : > { %v1316_v25 = vpop.trf.xlu1  ;;  %v1454_v27 = vadd.f32 %v1453_v32, %v1452_v60 }
 0x217   : > { %2584 = vmatpush3.bf16.msra.mxu1 %v1115_v36  ;;  %v4260_v36 = vld [vmem:[#allocation9_spill] sm:$0xff] }
 0x218   : > { %2705 = vmatprep.subr.msk.bf16.mxu1 %vm4244_vm12, %v1298_v1  ;;  %vm4250_vm12 = vmmov %vm4246_vm0  ;;  %v4262_v1 = vld [vmem:[#allocation11_spill] sm:$0xff]  ;;  %v1460_v10 = vmul.f32 %v1454_v27, %v3249_v50 }
 0x21a   : > { %2586 = vmatmul.mubr.bf16.vlgmr.msra.gmra.mrb[20].mxu1 %v1107_v18  ;;  %v1458_v18 = vmul.f32 %v1454_v27, %v4262_v1 }
 0x21b   : > { %2603 = vmatprep.mubr.msk.bf16.mxu1 %vm4246_vm0, %v1309_v53  ;;  %2602 = vmatpush3.bf16.msra.mxu1 %v1342_v61  ;;  %v1457_v53 = vmul.f32 %v1454_v27, %v4260_v36  ;;  %v4263_v61 = vld [vmem:[#allocation15_spill] sm:$0xff] }
 0x21c   : > { %2619 = vmatprep.subr.bf16.mxu1 %v4243_v7 }
 0x222   : > { %2604 = vmatmul.mubr.msk.bf16.vlgmr.msra.gmra.mrb[24].mxu1 %vm4247_vm2, %v1310_v6  ;;  %v4261_v6 = vld [vmem:[#allocation10_spill] sm:$0xff] }
 0x223   : > { %2607 = vmatprep.mubr.msk.bf16.mxu1 %vm4248_vm15, %v1311_v26  ;;  %vm4253_vm15 = vmmov %vm4246_vm0  ;;  %v1455_v31 = vmul.f32 %v1454_v27, %v4261_v6  ;;  %v1461_v26 = vmul.f32 %v1454_v27, %v4263_v61 }
 0x224   : > { %2591 = vmatprep.mubr.msk.bf16.mxu0 %vm4253_vm15, %v2771_v21 }
 0x22a   : > { %2608 = vmatmul.mubr.msk.bf16.gmra.mrb[28].mxu1 %vm4249_vm13, %v1312_v33  ;;  %v4264_v33 = vld [vmem:[#allocation14_spill] sm:$0xff] }
 0x22b   : > { %2611 = vmatprep.mubr.msk.bf16.mxu1 %vm4250_vm12, %v1313_v14  ;;  %v1456_v14 = vmul.f32 %v1454_v27, %v4264_v33 }
 0x232   : > { %2612 = vmatmul.mubr.msk.bf16.gmra.mrb[32].mxu1 %vm4251_vm14, %v1314_v57  ;;  %vm4259_vm14 = vmmov %vm4246_vm0  ;;  %v1459_v57 = vmul.f32 %v1454_v27, %v3239_v38 }
 0x233   : > { %2615 = vmatprep.mubr.msk.bf16.mxu1 %vm4252_vm11, %v1315_v16  ;;  %vm4255_vm11 = vcmask 1043456  }
 0x234   : > { %vm4256_vm13 = vmmov %vm4255_vm11 }
 0x235   : > { %vm4257_vm2 = vmmov %vm4255_vm11 }
 0x236   : > { %vm4258_vm12 = vmmov %vm4257_vm2 }
 0x23a   : > { %2616 = vmatmul.mubr.msk.bf16.gmra.mrb[36].mxu1 %vm4246_vm0, %v1316_v25  ;;  %v1462_v25 = vmul.f32 %v1454_v27, %v3247_v48  ;;  %vm4268_vm0 = vcmp.eq.s32.totalorder %v3197_v12, 0 }
 0x23b   : > { %2635 = vmatprep.mubr.msk.bf16.mxu1 %vm3012_vm1, %v4243_v7 }
 0x2c9   : > { %v782_v44 = vpop.f32.mrb[16].mxu1 }
 0x2ca   : > { %v2549_v22 = vpop.f32.mrb[17].mxu1  ;;  %v792_v41 = vpack.c.bf16 %v782_v44, %v782_v44 }
 0x2cb   : > { %v785_v59 = vpop.f32.mrb[18].mxu1 }
 0x2cc   : > { %v2550_v55 = vpop.f32.mrb[19].mxu1  ;;  %v1246_v28 = vsel %vm4258_vm12, %v792_v41, 0  ;;  %vm4278_vm12 = vcmp.eq.s32.totalorder %v4233_v35, 0 }
 0x2ed   : > { %v1150_v43 = vpop.f32.mrb[20].mxu1 }
 0x2ee   : > { %v1160_v20 = vpack.c.bf16 %v1150_v43, %v1150_v43  ;;  %v2587_v13 = vpop.f32.mrb[21].mxu1 }
 0x2ef   : > { %v1153_v5 = vpop.f32.mrb[22].mxu1 }
 0x2f0   : > { %v1178_v39 = vsel %vm4255_vm11, %v1160_v20, 0  ;;  %v2588_v34 = vpop.f32.mrb[23].mxu1  ;;  %2703 = vmatprep.subr.msk.bf16.mxu0 %vm4256_vm13, %v1160_v20  ;;  %vm4271_vm11 = vcmp.eq.s32.totalorder %v4229_v37, 0  ;;  %vm4273_vm13 = vcmp.eq.s32.totalorder %v4230_v9, 0  ;;  %v1739_v9 = vld [vmem:[%s3110_s11 + $0x18] sm:$0xff] }
 0x2f1   : > { %2590 = vmatpush3.bf16.msra.mxu0 %v1178_v39  ;;  %v1465_v39 = vmul.f32 %v1454_v27, %v3264_v0 }
 0x2f2   : > { %2704 = vmatprep.subr.msk.bf16.mxu0 %vm4257_vm2, %v792_v41  ;;  %vm4277_vm2 = vcmp.eq.s32.totalorder %v4232_v4, 0 }
 0x2f4   : > { %2592 = vmatmul.mubr.msk.bf16.vlgmr.msra.gmra.mrb[16].mxu0 %vm4259_vm14, %v2772_v54  ;;  %vm4279_vm14 = vcmp.eq.s32.totalorder %v4234_v58, 0 }
 0x2f5   : > { %2596 = vmatpush3.bf16.msra.mxu0 %v1246_v28  ;;  %v2605_v42 = vpop.f32.mrb[24].mxu1 }
 0x2f6   : > { %v1378_v52 = vpop.f32.mrb[25].mxu1  ;;  %v1473_v16 = vsub.f32 %v2605_v42, %v1457_v53 }
 0x2f7   : > { %v2606_v46 = vpop.f32.mrb[26].mxu1  ;;  %v1471_v21 = vsub.f32 %v1378_v52, %v1455_v31  ;;  %v4267_v52 = vld [vmem:[#allocation16_spill] sm:$0xff] }
 0x2f8   : > { %v1381_v17 = vpop.f32.mrb[27].mxu1  ;;  %v1474_v19 = vsub.f32 %v2606_v46, %v1458_v18  ;;  %v3794_v30 = vsel %vm340_vm3, -100.0, %v1473_v16  ;;  %v1463_v46 = vmul.f32 %v1454_v27, %v4267_v52  ;;  %v1464_v18 = vmul.f32 %v1454_v27, %v3296_v24 }
 0x2f9   : > { %v1472_v59 = vsub.f32 %v1381_v17, %v1456_v14  ;;  %v3802_v29 = vsel %vm338_vm4, -100.0, %v1471_v21  ;;  %v1466_v17 = vmul.f32 %v1454_v27, %v3294_v23 }
 0x2fa   : > { %v3812_v13 = vsel %vm341_vm5, -100.0, %v1474_v19  ;;  %v4269_v19 = vld [vmem:[#allocation8_spill] sm:$0xff] }
 0x2fb   : > { %v3823_v54 = vsel %vm339_vm6, -100.0, %v1472_v59  ;;  %vm4270_vm15 = vcmp.eq.s32.totalorder %v4269_v19, 0 }
 0x2fd   : > { %v2609_v11 = vpop.f32.mrb[28].mxu1 }
 0x2fe   : > { %v1477_v44 = vsub.f32 %v2609_v11, %v1461_v26  ;;  %v1394_v22 = vpop.f32.mrb[29].mxu1 }
 0x2ff   : > { %v1475_v8 = vsub.f32 %v1394_v22, %v1459_v57  ;;  %v2610_v55 = vpop.f32.mrb[30].mxu1 }
 0x300   : > { %v3798_v40 = vsel %vm344_vm7, -100.0, %v1477_v44  ;;  %v1478_v45 = vsub.f32 %v2610_v55, %v1462_v25  ;;  %v1397_v56 = vpop.f32.mrb[31].mxu1  ;;  %v4272_v55 = vld [vmem:[#allocation21_spill] sm:$0xff] }
 0x301   : > { %v1505_v60 = vmax.f32 %v3794_v30, %v3798_v40  ;;  %v3808_v43 = vsel %vm342_vm8, -100.0, %v1475_v8  ;;  %v1476_v20 = vsub.f32 %v1397_v56, %v1460_v10 }
 0x302   : > { %v1503_v5 = vmax.f32 %v3802_v29, %v3808_v43  ;;  %v3818_v41 = vsel %vm345_vm9, -100.0, %v1478_v45  ;;  %v1469_v45 = vmul.f32 %v1454_v27, %v4272_v55 }
 0x303   : > { %v1506_v32 = vmax.f32 %v3812_v13, %v3818_v41  ;;  %v3829_v42 = vsel %vm343_vm10, -100.0, %v1476_v20 }
 0x304   : > { %v1504_v53 = vmax.f32 %v3823_v54, %v3829_v42 }
 0x305   : > { %v2613_v31 = vpop.f32.mrb[32].mxu1 }
 0x306   : > { %v1481_v26 = vsub.f32 %v2613_v31, %v1465_v39  ;;  %v1410_v14 = vpop.f32.mrb[33].mxu1 }
 0x307   : > { %v1479_v57 = vsub.f32 %v1410_v14, %v1463_v46  ;;  %v2614_v16 = vpop.f32.mrb[34].mxu1 }
 0x308   : > { %v3838_v25 = vsel %vm4268_vm0, -100.0, %v1481_v26  ;;  %v1482_v21 = vsub.f32 %v2614_v16, %v1466_v17  ;;  %v1413_v11 = vpop.f32.mrb[35].mxu1  ;;  %v4275_v17 = vld [vmem:[#allocation23_spill] sm:$0xff]  ;;  %vm4280_vm0 = vcmask 64512  }
 0x309   : > { %v1509_v10 = vmax.f32 %v1505_v60, %v3838_v25  ;;  %v3843_v44 = vsel %vm4270_vm15, -100.0, %v1479_v57  ;;  %v1480_v22 = vsub.f32 %v1413_v11, %v1464_v18  ;;  %v4274_v60 = vld [vmem:[#allocation22_spill] sm:$0xff]  ;;  %v1470_v31 = vmul.f32 %v1454_v27, %v4275_v17  ;;  %v4276_v18 = vld [vmem:[#allocation24_spill] sm:$0xff] }
 0x30a   : > { %v1507_v59 = vmax.f32 %v1503_v5, %v3843_v44  ;;  %v3848_v8 = vsel %vm4271_vm11, -100.0, %v1482_v21  ;;  %v1467_v39 = vmul.f32 %v1454_v27, %v4274_v60  ;;  %v1468_v26 = vmul.f32 %v1454_v27, %v4276_v18  ;;  %v2774_v17 = vld [vmem:[%s4147_s3 + $0x8] sm:$0xff]   ;;  %vm4282_vm11 = vmmov %vm4280_vm0 }
 0x30b   : > { %v1510_v56 = vmax.f32 %v1506_v32, %v3848_v8  ;;  %v3854_v20 = vsel %vm4273_vm13, -100.0, %v1480_v22  ;;  %vm4281_vm15 = vcmp.eq.s32.totalorder %v4235_v15, 0  ;;  %vm4283_vm13 = vmmov %vm4280_vm0 }
 0x30c   : > { %v1508_v46 = vmax.f32 %v1504_v53, %v3854_v20  ;;  %v2773_v53 = vld [vmem:[%s4147_s3] sm:$0xff]  }
 0x30d   : > { %v2617_v5 = vpop.f32.mrb[36].mxu1  ;;  %2597 = vmatprep.mubr.msk.bf16.mxu0 %vm4280_vm0, %v2773_v53 }
 0x30e   : > { %v1485_v14 = vsub.f32 %v2617_v5, %v1469_v45  ;;  %v1426_v57 = vpop.f32.mrb[37].mxu1  ;;  %v1740_v5 = vpack.c.bf16 %v1739_v9, %v1739_v9  ;;  %2598 = vmatmul.mubr.msk.bf16.vlgmr.msra.gmra.mrb[16].mxu0 %vm4282_vm11, %v2774_v17 }
 0x30f   : > { %v1483_v16 = vsub.f32 %v1426_v57, %v1467_v39  ;;  %v2618_v21 = vpop.f32.mrb[38].mxu1 }
 0x310   : > { %v3862_v32 = vsel %vm4277_vm2, -100.0, %v1485_v14  ;;  %v1486_v11 = vsub.f32 %v2618_v21, %v1470_v31  ;;  %v1429_v22 = vpop.f32.mrb[39].mxu1  ;;  %1741 = vxpose.xlu1.c.b16.start.end [1/1] (short) %v1740_v5, 128  ;;  %vm4284_vm2 = vcmask 1043456  }
 0x311   : > { %v1513_v27 = vmax.f32 %v1509_v10, %v3862_v32  ;;  %v3874_v45 = vsel %vm4278_vm12, -100.0, %v1483_v16  ;;  %v1484_v39 = vsub.f32 %v1429_v22, %v1468_v26  ;;  %vm4285_vm12 = vmmov %vm4284_vm2 }
 0x312   : > { %v1511_v31 = vmax.f32 %v1507_v59, %v3874_v45  ;;  %v3879_v14 = vsel %vm4279_vm14, -100.0, %v1486_v11  ;;  %vm4286_vm14 = vmmov %vm4284_vm2 }
 0x313   : > { %v1514_v57 = vmax.f32 %v1510_v56, %v3879_v14  ;;  %v3885_v21 = vsel %vm4281_vm15, -100.0, %v1484_v39  ;;  %vm4287_vm0 = vmmov %vm4284_vm2 }
 0x314   : > { %v1512_v10 = vmax.f32 %v1508_v46, %v3885_v21  ;;  %vm4288_vm15 = vmmov %vm4282_vm11 }
 0x315   : > { %v1516_v9 = vmax.f32 %v1513_v27, %v1514_v57 }
 0x316   : > { %v1515_v26 = vmax.f32 %v1511_v31, %v1512_v10 }
 0x318   : > { %v1517_v59 = vmax.f32 %v1515_v26, %v1516_v9 }
 0x31a   : > { %v1518_v16 = vrot.slane %v1517_v59, 4 }
 0x31c   : > { %v1519_v22 = vmax.f32 %v1517_v59, %v1518_v16 }
 0x31e   : > { %v1520_v11 = vrot.slane %v1519_v22, 2 }
 0x320   : > { %v1521_v58 = vmax.f32 %v1519_v22, %v1520_v11 }
 0x322   : > { %v1522_v35 = vrot.slane %v1521_v58, 1 }
 0x324   : > { %v1523_v53 = vmax.f32 %v1521_v58, %v1522_v35 }
 0x326   : > { %v1524_v56 = vsub.f32 %v3802_v29, %v1523_v53  ;;  %v1525_v15 = vsub.f32 %v3823_v54, %v1523_v53  ;;  %v1526_v39 = vsub.f32 %v3794_v30, %v1523_v53  ;;  %v1527_v5 = vsub.f32 %v3812_v13, %v1523_v53 }
 0x327   : > { %v1528_v17 = vsub.f32 %v3808_v43, %v1523_v53  ;;  %v1529_v46 = vsub.f32 %v3829_v42, %v1523_v53  ;;  %v1530_v27 = vsub.f32 %v3798_v40, %v1523_v53  ;;  %v1531_v31 = vsub.f32 %v3818_v41, %v1523_v53 }
 0x328   : > { %v1532_v57 = vsub.f32 %v3843_v44, %v1523_v53  ;;  %v1533_v35 = vsub.f32 %v3854_v20, %v1523_v53  ;;  %v1534_v58 = vsub.f32 %v3838_v25, %v1523_v53  ;;  %v1535_v29 = vsub.f32 %v3848_v8, %v1523_v53 }
 0x329   : > { %v1536_v30 = vsub.f32 %v3874_v45, %v1523_v53  ;;  %v1537_v13 = vsub.f32 %v3885_v21, %v1523_v53  ;;  %v1538_v43 = vsub.f32 %v3862_v32, %v1523_v53  ;;  %v1539_v54 = vsub.f32 %v3879_v14, %v1523_v53 }
 0x32a   : > { %v1540_v42 = vmul.f32 1.442695, %v1524_v56  ;;  %v1542_v40 = vmul.f32 1.442695, %v1525_v15  ;;  %v1544_v10 = vmul.f32 1.442695, %v1526_v39 }
 0x32b   : > { %v1546_v41 = vmul.f32 1.442695, %v1527_v5  ;;  %v1548_v44 = vmul.f32 1.442695, %v1528_v17  ;;  %v1550_v25 = vmul.f32 1.442695, %v1529_v46 }
 0x32c   : > { %2859 = vpow2.f32 %v1540_v42  ;;  %v1552_v8 = vmul.f32 1.442695, %v1530_v27  ;;  %v1554_v20 = vmul.f32 1.442695, %v1531_v31  ;;  %v1556_v32 = vmul.f32 1.442695, %v1532_v57 }
 0x32d   : > { %2861 = vpow2.f32 %v1542_v40  ;;  %v1558_v15 = vmul.f32 1.442695, %v1533_v35  ;;  %v1560_v16 = vmul.f32 1.442695, %v1534_v58  ;;  %v1562_v53 = vmul.f32 1.442695, %v1535_v29 }
 0x32e   : > { %2863 = vpow2.f32 %v1544_v10  ;;  %v1564_v5 = vmul.f32 1.442695, %v1536_v30  ;;  %v1566_v27 = vmul.f32 1.442695, %v1537_v13  ;;  %v1568_v35 = vmul.f32 1.442695, %v1538_v43 }
 0x32f   : > { %2865 = vpow2.f32 %v1546_v41  ;;  %v1570_v58 = vmul.f32 1.442695, %v1539_v54 }
 0x330   : > { %2867 = vpow2.f32 %v1548_v44 }
 0x331   : > { %2869 = vpow2.f32 %v1550_v25 }
 0x332   : > { %2871 = vpow2.f32 %v1552_v8 }
 0x333   : > { %2873 = vpow2.f32 %v1554_v20 }
 0x334   : > { %2875 = vpow2.f32 %v1556_v32 }
 0x335   : > { %2877 = vpow2.f32 %v1558_v15 }
 0x336   : > { %v2860_v45 = vpop.eup %2859  ;;  %2879 = vpow2.f32 %v1560_v16 }
 0x337   : > { %v2862_v21 = vpop.eup %2861  ;;  %2881 = vpow2.f32 %v1562_v53 }
 0x338   : > { %v1572_v9 = vadd.f32 %v2862_v21, %v2860_v45  ;;  %v2864_v14 = vpop.eup %2863  ;;  %2883 = vpow2.f32 %v1564_v5 }
 0x339   : > { %v2866_v59 = vpop.eup %2865  ;;  %2885 = vpow2.f32 %v1566_v27 }
 0x33a   : > { %v1573_v26 = vadd.f32 %v2864_v14, %v1572_v9  ;;  %v2868_v11 = vpop.eup %2867  ;;  %2887 = vpow2.f32 %v1568_v35 }
 0x33b   : > { %v2870_v39 = vpop.eup %2869  ;;  %2889 = vpow2.f32 %v1570_v58 }
 0x33c   : > { %v1574_v22 = vadd.f32 %v2866_v59, %v1573_v26  ;;  %v2872_v46 = vpop.eup %2871 }
 0x33d   : > { %v2874_v57 = vpop.eup %2873 }
 0x33e   : > { %v1575_v56 = vadd.f32 %v2868_v11, %v1574_v22  ;;  %v2876_v40 = vpop.eup %2875 }
 0x33f   : > { %v2878_v41 = vpop.eup %2877 }
 0x340   : > { %v1576_v17 = vadd.f32 %v2870_v39, %v1575_v56  ;;  %v2880_v44 = vpop.eup %2879 }
 0x341   : > { %v2882_v30 = vpop.eup %2881 }
 0x342   : > { %v1577_v31 = vadd.f32 %v2872_v46, %v1576_v17  ;;  %v2884_v20 = vpop.eup %2883 }
 0x343   : > { %v2886_v13 = vpop.eup %2885 }
 0x344   : > { %v1578_v42 = vadd.f32 %v2874_v57, %v1577_v31  ;;  %v2888_v15 = vpop.eup %2887 }
 0x345   : > { %v2890_v43 = vpop.eup %2889 }
 0x346   : > { %v1579_v10 = vadd.f32 %v2876_v40, %v1578_v42 }
 0x348   : > { %v1580_v29 = vadd.f32 %v2878_v41, %v1579_v10 }
 0x34a   : > { %v1581_v25 = vadd.f32 %v2880_v44, %v1580_v29 }
 0x34c   : > { %v1582_v8 = vadd.f32 %v2882_v30, %v1581_v25 }
 0x34e   : > { %v1583_v32 = vadd.f32 %v2884_v20, %v1582_v8 }
 0x350   : > { %v1584_v9 = vadd.f32 %v2886_v13, %v1583_v32 }
 0x352   : > { %v1585_v26 = vadd.f32 %v2888_v15, %v1584_v9 }
 0x354   : > { %v1586_v16 = vadd.f32 %v2890_v43, %v1585_v26 }
 0x356   : > { %v1587_v22 = vrot.slane %v1586_v16, 4 }
 0x358   : > { %v1588_v53 = vadd.f32 %v1587_v22, %v1586_v16 }
 0x35a   : > { %v1589_v54 = vrot.slane %v1588_v53, 2 }
 0x35c   : > { %v1590_v56 = vadd.f32 %v1589_v54, %v1588_v53 }
 0x35e   : > { %v1591_v5 = vrot.slane %v1590_v56, 1 }
 0x360   : > { %v1592_v17 = vadd.f32 %v1591_v5, %v1590_v56 }
 0x362   : > { %2891 = vrcp.f32 %v1592_v17  ;;  %v2776_v17 = vld [vmem:[%s4147_s3 + $0x28] sm:$0xff]  }
 0x36c   : > { %v2892_v27 = vpop.eup %2891 }
 0x36d   : > { %v1594_v31 = vmul.f32 %v2892_v27, %v2860_v45  ;;  %v1595_v35 = vmul.f32 %v2892_v27, %v2862_v21  ;;  %v1596_v42 = vmul.f32 %v2892_v27, %v2864_v14  ;;  %v1597_v58 = vmul.f32 %v2892_v27, %v2866_v59 }
 0x36e   : > { %v1598_v10 = vmul.f32 %v2892_v27, %v2868_v11  ;;  %v1599_v29 = vmul.f32 %v2892_v27, %v2870_v39  ;;  %v1600_v25 = vmul.f32 %v2892_v27, %v2872_v46  ;;  %v1601_v8 = vmul.f32 %v2892_v27, %v2874_v57  ;;  %v1737_v57 = vld [vmem:[%s3115_s14 + $0x18] sm:$0xff] }
 0x36f   : > { %v1612_v32 = vpack.c.bf16 %v1595_v35, %v1594_v31  ;;  %v1613_v9 = vpack.c.bf16 %v1597_v58, %v1596_v42  ;;  %v1602_v4 = vmul.f32 %v2892_v27, %v2876_v40  ;;  %v1603_v26 = vmul.f32 %v2892_v27, %v2878_v41 }
 0x370   : > { %v1614_v18 = vpack.c.bf16 %v1599_v29, %v1598_v10  ;;  %v1615_v16 = vpack.c.bf16 %v1601_v8, %v1600_v25  ;;  %v1604_v22 = vmul.f32 %v2892_v27, %v2880_v44  ;;  %v1605_v53 = vmul.f32 %v2892_v27, %v2882_v30  ;;  %v1881_v25 = vld [vmem:[%s3115_s14 + $0x38] sm:$0xff] }
 0x371   : > { %2620 = vmatpush3.bf16.msra.mxu1 %v1612_v32  ;;  %v1616_v54 = vpack.c.bf16 %v1603_v26, %v1602_v4  ;;  %v1606_v56 = vmul.f32 %v2892_v27, %v2884_v20  ;;  %v1607_v5 = vmul.f32 %v2892_v27, %v2886_v13  ;;  %v1608_v45 = vmul.f32 %v2892_v27, %v2888_v15  ;;  %v1610_v4 = vld [vmem:[%s3110_s11 + $0x30] sm:$0xff] }
 0x372   : > { %2621 = vmatprep.subr.bf16.mxu1 %v4243_v7  ;;  %v1617_v21 = vpack.c.bf16 %v1605_v53, %v1604_v22  ;;  %v1609_v14 = vmul.f32 %v2892_v27, %v2890_v43  ;;  %v1611_v39 = vpack.c.bf16 %v1610_v4, %v1610_v4  ;;  %v1738_v20 = vpack.c.bf16 %v1737_v57, %v1737_v57 }
 0x373   : > { %v1618_v59 = vpack.c.bf16 %v1607_v5, %v1606_v56  ;;  %v2415_v8 = vmul.f32 -1.442695, %v1881_v25 }
 0x374   : > { %v1619_v11 = vpack.c.bf16 %v1609_v14, %v1608_v45  ;;  %v1782_v27 = vsel %vm4287_vm0, %v1738_v20, 0 }
 0x375   : > { %2622 = vmatpush3.bf16.msra.mxu1 %v1613_v9  ;;  %2893 = vpow2.f32 %v2415_v8 }
 0x376   : > { %2623 = vmatprep.subr.bf16.mxu1 %v4243_v7  ;;  %v1749_v46 = vpop.trf.xlu1 }
 0x379   : > { %2624 = vmatpush3.bf16.msra.mxu1 %v1614_v18  ;;  %v2775_v18 = vld [vmem:[%s4147_s3 + $0x20] sm:$0xff]  }
 0x37a   : > { %2625 = vmatprep.subr.bf16.mxu1 %v4243_v7  ;;  %2641 = vmatprep.mubr.msk.bf16.mxu0 %vm4283_vm13, %v2775_v18  ;;  %v1750_v40 = vpop.trf.xlu1  ;;  %vm4289_vm13 = vmmov %vm4282_vm11 }
 0x37d   : > { %2626 = vmatpush3.bf16.msra.mxu1 %v1615_v16 }
 0x37e   : > { %2627 = vmatprep.subr.bf16.mxu1 %v4243_v7  ;;  %v1751_v31 = vpop.trf.xlu1 }
 0x37f   : > { %v2894_v32 = vpop.eup %2893 }
 0x380   : > { %v1885_v9 = vadd.f32 1.0, %v2894_v32 }
 0x381   : > { %2628 = vmatpush3.bf16.msra.mxu1 %v1616_v54 }
 0x382   : > { %2629 = vmatprep.subr.bf16.mxu1 %v4243_v7  ;;  %v1752_v35 = vpop.trf.xlu1  ;;  %2895 = vrcp.f32 %v1885_v9 }
 0x385   : > { %2630 = vmatpush3.bf16.msra.mxu1 %v1617_v21 }
 0x386   : > { %2631 = vmatprep.subr.bf16.mxu1 %v4243_v7  ;;  %v1753_v42 = vpop.trf.xlu1 }
 0x389   : > { %2632 = vmatpush3.bf16.msra.mxu1 %v1618_v59 }
 0x38a   : > { %2633 = vmatprep.subr.bf16.mxu1 %v4243_v7  ;;  %v1754_v58 = vpop.trf.xlu1 }
 0x38c   : > { %v2896_v26 = vpop.eup %2895 }
 0x38d   : > { %2634 = vmatpush3.bf16.msra.mxu1 %v1619_v11  ;;  %v1888_v16 = vmul.f32 %v2896_v26, %v4254_v3 }
 0x38e   : > { %v1755_v10 = vpop.trf.xlu1 }
 0x38f   : > { %v1889_v22 = vrot.slane %v1888_v16, 4 }
 0x390   : > { %2636 = vmatmul.mubr.bf16.vlgmr.msra.gmra.mrb[40].mxu1 %v1611_v39 }
 0x391   : > { %v1890_v53 = vadd.f32 %v1889_v22, %v1888_v16 }
 0x392   : > { %v1756_v29 = vpop.trf.xlu1 }
 0x393   : > { %v1891_v54 = vrot.slane %v1890_v53, 2 }
 0x395   : > { %v1892_v56 = vadd.f32 %v1891_v54, %v1890_v53  ;;  %v4299_v54 = vld [vmem:[#allocation13_spill] sm:$0xff] }
 0x397   : > { %v1893_v5 = vrot.slane %v1892_v56, 1 }
 0x399   : > { %v1894_v45 = vadd.f32 %v1893_v5, %v1892_v56 }
 0x39b   : > { %v1897_v11 = vmul.f32 %v1894_v45, %v4260_v36  ;;  %v1895_v39 = vmul.f32 %v1894_v45, %v4261_v6  ;;  %v1898_v18 = vmul.f32 %v1894_v45, %v4262_v1  ;;  %v1896_v3 = vmul.f32 %v1894_v45, %v4264_v33 }
 0x39c   : > { %v1899_v57 = vmul.f32 %v1894_v45, %v3239_v38  ;;  %v1909_v53 = vmul.f32 %v1894_v45, %v4272_v55  ;;  %v1907_v5 = vmul.f32 %v1894_v45, %v4274_v60  ;;  %v4303_v55 = vld [vmem:[#allocation17_spill] sm:$0xff]  ;;  %v4305_v60 = vld [vmem:[#allocation18_spill] sm:$0xff] }
 0x463   : > { %v1654_v41 = vpop.f32.mrb[40].mxu1 }
 0x464   : > { %v1664_v44 = vpack.c.bf16 %v1654_v41, %v1654_v41  ;;  %v2637_v30 = vpop.f32.mrb[41].mxu1  ;;  %v1902_v41 = vmul.f32 %v1894_v45, %v3247_v48 }
 0x465   : > { %v1657_v13 = vpop.f32.mrb[42].mxu1 }
 0x466   : > { %v1682_v15 = vsel %vm4284_vm2, %v1664_v44, 0  ;;  %v2638_v43 = vpop.f32.mrb[43].mxu1  ;;  %2706 = vmatprep.subr.msk.bf16.mxu0 %vm4285_vm12, %v1664_v44  ;;  %vm4290_vm2 = vmmov %vm4282_vm11 }
 0x467   : > { %2640 = vmatpush3.bf16.msra.mxu0 %v1682_v15  ;;  %vm4291_vm12 = vmmov %vm4290_vm2 }
 0x468   : > { %2707 = vmatprep.subr.msk.bf16.mxu0 %vm4286_vm14, %v1738_v20  ;;  %vm4292_vm14 = vmmov %vm4290_vm2  ;;  %v1900_v20 = vmul.f32 %v1894_v45, %v3249_v50 }
 0x469   : > { %vm4293_vm0 = vmmov %vm4290_vm2 }
 0x46a   : > { %2642 = vmatmul.mubr.msk.bf16.vlgmr.msra.gmra.mrb[16].mxu0 %vm4288_vm15, %v2776_v17  ;;  %vm4294_vm15 = vmmov %vm4293_vm0 }
 0x46b   : > { %2646 = vmatpush3.bf16.msra.mxu0 %v1782_v27  ;;  %2647 = vmatprep.mubr.msk.bf16.mxu0 %vm4282_vm11, %v1749_v46  ;;  %vm4295_vm11 = vmmov %vm4293_vm0  ;;  %v1901_v46 = vmul.f32 %v1894_v45, %v4263_v61 }
 0x46c   : > { %2663 = vmatprep.subr.bf16.mxu0 %v4243_v7 }
 0x472   : > { %2648 = vmatmul.mubr.msk.bf16.vlgmr.msra.gmra.mrb[20].mxu0 %vm4289_vm13, %v1750_v40  ;;  %vm4312_vm13 = vcmask 1043456  }
 0x473   : > { %2651 = vmatprep.mubr.msk.bf16.mxu0 %vm4290_vm2, %v1751_v31  ;;  %vm4313_vm2 = vmmov %vm4312_vm13 }
 0x47a   : > { %2652 = vmatmul.mubr.msk.bf16.gmra.mrb[24].mxu0 %vm4291_vm12, %v1752_v35  ;;  %v1905_v35 = vmul.f32 %v1894_v45, %v3264_v0  ;;  %v1904_v0 = vmul.f32 %v1894_v45, %v3296_v24  ;;  %vm4314_vm12 = vmmov %vm4293_vm0 }
 0x47b   : > { %2655 = vmatprep.mubr.msk.bf16.mxu0 %vm4292_vm14, %v1753_v42 }
 0x482   : > { %2656 = vmatmul.mubr.msk.bf16.gmra.mrb[28].mxu0 %vm4293_vm0, %v1754_v58  ;;  %v1903_v58 = vmul.f32 %v1894_v45, %v4267_v52 }
 0x483   : > { %2659 = vmatprep.mubr.msk.bf16.mxu0 %vm4294_vm15, %v1755_v10  ;;  %v1906_v10 = vmul.f32 %v1894_v45, %v3294_v23 }
 0x48a   : > { %2660 = vmatmul.mubr.msk.bf16.gmra.mrb[32].mxu0 %vm4295_vm11, %v1756_v29 }
 0x48b   : > { %2679 = vmatprep.mubr.msk.bf16.mxu0 %vm3012_vm1, %v4243_v7  ;;  %vm4296_vm1 = vcmp.eq.s32.totalorder %v3197_v12, 0 }
 0x545   : > { %v2649_v21 = vpop.f32.mrb[20].mxu0 }
 0x546   : > { %v1818_v14 = vpop.f32.mrb[21].mxu0  ;;  %v1913_v40 = vsub.f32 %v2649_v21, %v1897_v11  ;;  %v4301_v21 = vld [vmem:[#allocation23_spill] sm:$0xff]  ;;  %v4302_v11 = vld [vmem:[#allocation24_spill] sm:$0xff] }
 0x547   : > { %v2650_v59 = vpop.f32.mrb[22].mxu0  ;;  %v1911_v44 = vsub.f32 %v1818_v14, %v1895_v39  ;;  %v1910_v14 = vmul.f32 %v1894_v45, %v4301_v21 }
 0x548   : > { %v1821_v4 = vpop.f32.mrb[23].mxu0  ;;  %v1914_v13 = vsub.f32 %v2650_v59, %v1898_v18  ;;  %v3949_v1 = vsel %vm340_vm3, -100.0, %v1913_v40  ;;  %vm4297_vm3 = vcmp.eq.s32.totalorder %v4269_v19, 0 }
 0x549   : > { %v1912_v43 = vsub.f32 %v1821_v4, %v1896_v3  ;;  %v3957_v33 = vsel %vm338_vm4, -100.0, %v1911_v44  ;;  %vm4298_vm4 = vcmp.eq.s32.totalorder %v4229_v37, 0  ;;  %v1908_v4 = vmul.f32 %v1894_v45, %v4302_v11  ;;  %v4307_v45 = vld [vmem:[#allocation19_spill] sm:$0xff] }
 0x54a   : > { %v3967_v31 = vsel %vm341_vm5, -100.0, %v1914_v13  ;;  %vm4300_vm5 = vcmp.eq.s32.totalorder %v4299_v54, 0 }
 0x54b   : > { %v3978_v42 = vsel %vm339_vm6, -100.0, %v1912_v43  ;;  %vm4304_vm6 = vcmp.eq.s32.totalorder %v4303_v55, 0 }
 0x54d   : > { %v2653_v30 = vpop.f32.mrb[24].mxu0 }
 0x54e   : > { %v1917_v36 = vsub.f32 %v2653_v30, %v1901_v46  ;;  %v1834_v15 = vpop.f32.mrb[25].mxu0 }
 0x54f   : > { %v1915_v6 = vsub.f32 %v1834_v15, %v1899_v57  ;;  %v2654_v17 = vpop.f32.mrb[26].mxu0  ;;  %v4309_v15 = vld [vmem:[#allocation20_spill] sm:$0xff] }
 0x550   : > { %v3953_v38 = vsel %vm344_vm7, -100.0, %v1917_v36  ;;  %v1918_v61 = vsub.f32 %v2654_v17, %v1902_v41  ;;  %v1837_v48 = vpop.f32.mrb[27].mxu0  ;;  %vm4306_vm7 = vcmp.eq.s32.totalorder %v4305_v60, 0 }
 0x551   : > { %v1945_v50 = vmax.f32 %v3949_v1, %v3953_v38  ;;  %v3963_v27 = vsel %vm342_vm8, -100.0, %v1915_v6  ;;  %v1916_v47 = vsub.f32 %v1837_v48, %v1900_v20  ;;  %vm4308_vm8 = vcmp.eq.s32.totalorder %v4307_v45, 0 }
 0x552   : > { %v1943_v62 = vmax.f32 %v3957_v33, %v3963_v27  ;;  %v3973_v49 = vsel %vm345_vm9, -100.0, %v1918_v61  ;;  %vm4310_vm9 = vcmp.eq.s32.totalorder %v4309_v15, 0 }
 0x553   : > { %v1946_v63 = vmax.f32 %v3967_v31, %v3973_v49  ;;  %v3984_v51 = vsel %vm343_vm10, -100.0, %v1916_v47  ;;  %vm4311_vm10 = vmmov %vm4293_vm0 }
 0x554   : > { %v1944_v2 = vmax.f32 %v3978_v42, %v3984_v51 }
 0x555   : > { %v2657_v29 = vpop.f32.mrb[28].mxu0 }
 0x556   : > { %v1921_v34 = vsub.f32 %v2657_v29, %v1905_v35  ;;  %v1850_v25 = vpop.f32.mrb[29].mxu0 }
 0x557   : > { %v1919_v8 = vsub.f32 %v1850_v25, %v1903_v58  ;;  %v2658_v32 = vpop.f32.mrb[30].mxu0 }
 0x558   : > { %v3993_v9 = vsel %vm4296_vm1, -100.0, %v1921_v34  ;;  %v1922_v28 = vsub.f32 %v2658_v32, %v1906_v10  ;;  %v1853_v26 = vpop.f32.mrb[31].mxu0 }
 0x559   : > { %v1949_v52 = vmax.f32 %v1945_v50, %v3993_v9  ;;  %v3998_v16 = vsel %vm4297_vm3, -100.0, %v1919_v8  ;;  %v1920_v23 = vsub.f32 %v1853_v26, %v1904_v0 }
 0x55a   : > { %v1947_v22 = vmax.f32 %v1943_v62, %v3998_v16  ;;  %v4003_v24 = vsel %vm4298_vm4, -100.0, %v1922_v28 }
 0x55b   : > { %v1950_v12 = vmax.f32 %v1946_v63, %v4003_v24  ;;  %v4009_v56 = vsel %vm4300_vm5, -100.0, %v1920_v23 }
 0x55c   : > { %v1948_v19 = vmax.f32 %v1944_v2, %v4009_v56 }
 0x55d   : > { %v2661_v59 = vpop.f32.mrb[32].mxu0 }
 0x55e   : > { %v1925_v37 = vsub.f32 %v2661_v59, %v1909_v53  ;;  %v1866_v39 = vpop.f32.mrb[33].mxu0 }
 0x55f   : > { %v1923_v18 = vsub.f32 %v1866_v39, %v1907_v5  ;;  %v2662_v46 = vpop.f32.mrb[34].mxu0 }
 0x560   : > { %v4017_v3 = vsel %vm4304_vm6, -100.0, %v1925_v37  ;;  %v1926_v57 = vsub.f32 %v2662_v46, %v1910_v14  ;;  %v1869_v40 = vpop.f32.mrb[35].mxu0 }
 0x561   : > { %v1953_v41 = vmax.f32 %v1949_v52, %v4017_v3  ;;  %v4022_v44 = vsel %vm4306_vm7, -100.0, %v1923_v18  ;;  %v1924_v30 = vsub.f32 %v1869_v40, %v1908_v4 }
 0x562   : > { %v1951_v20 = vmax.f32 %v1947_v22, %v4022_v44  ;;  %v4027_v13 = vsel %vm4308_vm8, -100.0, %v1926_v57 }
 0x563   : > { %v1954_v36 = vmax.f32 %v1950_v12, %v4027_v13  ;;  %v4032_v43 = vsel %vm4310_vm9, -100.0, %v1924_v30 }
 0x564   : > { %v1952_v6 = vmax.f32 %v1948_v19, %v4032_v43 }
 0x565   : > { %v1956_v17 = vmax.f32 %v1953_v41, %v1954_v36 }
 0x566   : > { %v1955_v61 = vmax.f32 %v1951_v20, %v1952_v6 }
 0x568   : > { %v1957_v48 = vmax.f32 %v1955_v61, %v1956_v17 }
 0x56a   : > { %v1958_v50 = vrot.slane %v1957_v48, 4 }
 0x56c   : > { %v1959_v47 = vmax.f32 %v1957_v48, %v1958_v50 }
 0x56e   : > { %v1960_v62 = vrot.slane %v1959_v47, 2 }
 0x570   : > { %v1961_v35 = vmax.f32 %v1959_v47, %v1960_v62 }
 0x572   : > { %v1962_v63 = vrot.slane %v1961_v35, 1 }
 0x574   : > { %v1963_v58 = vmax.f32 %v1961_v35, %v1962_v63 }
 0x576   : > { %v1964_v2 = vsub.f32 %v3957_v33, %v1963_v58  ;;  %v1965_v10 = vsub.f32 %v3978_v42, %v1963_v58  ;;  %v1966_v29 = vsub.f32 %v3949_v1, %v1963_v58  ;;  %v1967_v0 = vsub.f32 %v3967_v31, %v1963_v58 }
 0x577   : > { %v1968_v34 = vsub.f32 %v3963_v27, %v1963_v58  ;;  %v1969_v25 = vsub.f32 %v3984_v51, %v1963_v58  ;;  %v1970_v8 = vsub.f32 %v3953_v38, %v1963_v58  ;;  %v1971_v32 = vsub.f32 %v3973_v49, %v1963_v58 }
 0x578   : > { %v1972_v28 = vsub.f32 %v3998_v16, %v1963_v58  ;;  %v1973_v26 = vsub.f32 %v4009_v56, %v1963_v58  ;;  %v1974_v33 = vsub.f32 %v3993_v9, %v1963_v58  ;;  %v1975_v42 = vsub.f32 %v4003_v24, %v1963_v58 }
 0x579   : > { %v1976_v1 = vsub.f32 %v4022_v44, %v1963_v58  ;;  %v1977_v31 = vsub.f32 %v4032_v43, %v1963_v58  ;;  %v1978_v27 = vsub.f32 %v4017_v3, %v1963_v58  ;;  %v1979_v51 = vsub.f32 %v4027_v13, %v1963_v58 }
 0x57a   : > { %v1980_v52 = vmul.f32 1.442695, %v1964_v2  ;;  %v1982_v38 = vmul.f32 1.442695, %v1965_v10  ;;  %v1984_v23 = vmul.f32 1.442695, %v1966_v29 }
 0x57b   : > { %v1986_v49 = vmul.f32 1.442695, %v1967_v0  ;;  %v1988_v16 = vmul.f32 1.442695, %v1968_v34  ;;  %v1990_v9 = vmul.f32 1.442695, %v1969_v25 }
 0x57c   : > { %2897 = vpow2.f32 %v1980_v52  ;;  %v1992_v22 = vmul.f32 1.442695, %v1970_v8  ;;  %v1994_v24 = vmul.f32 1.442695, %v1971_v32  ;;  %v1996_v54 = vmul.f32 1.442695, %v1972_v28 }
 0x57d   : > { %2899 = vpow2.f32 %v1982_v38  ;;  %v1998_v19 = vmul.f32 1.442695, %v1973_v26  ;;  %v2000_v59 = vmul.f32 1.442695, %v1974_v33  ;;  %v2002_v37 = vmul.f32 1.442695, %v1975_v42 }
 0x57e   : > { %2901 = vpow2.f32 %v1984_v23  ;;  %v2004_v46 = vmul.f32 1.442695, %v1976_v1  ;;  %v2006_v57 = vmul.f32 1.442695, %v1977_v31  ;;  %v2008_v60 = vmul.f32 1.442695, %v1978_v27 }
 0x57f   : > { %2903 = vpow2.f32 %v1986_v49  ;;  %v2010_v20 = vmul.f32 1.442695, %v1979_v51 }
 0x580   : > { %2905 = vpow2.f32 %v1988_v16 }
 0x581   : > { %2907 = vpow2.f32 %v1990_v9 }
 0x582   : > { %2909 = vpow2.f32 %v1992_v22 }
 0x583   : > { %2911 = vpow2.f32 %v1994_v24 }
 0x584   : > { %2913 = vpow2.f32 %v1996_v54 }
 0x585   : > { %2915 = vpow2.f32 %v1998_v19 }
 0x586   : > { %v2898_v53 = vpop.eup %2897  ;;  %2917 = vpow2.f32 %v2000_v59 }
 0x587   : > { %v2900_v12 = vpop.eup %2899  ;;  %2919 = vpow2.f32 %v2002_v37  ;;  %v2177_v37 = vld [vmem:[%s4148_s4] sm:$0xff] }
 0x588   : > { %v2012_v56 = vadd.f32 %v2900_v12, %v2898_v53  ;;  %v2902_v5 = vpop.eup %2901  ;;  %2921 = vpow2.f32 %v2004_v46 }
 0x589   : > { %v2904_v14 = vpop.eup %2903  ;;  %2923 = vpow2.f32 %v2006_v57 }
 0x58a   : > { %v2013_v21 = vadd.f32 %v2902_v5, %v2012_v56  ;;  %v2906_v4 = vpop.eup %2905  ;;  %2925 = vpow2.f32 %v2008_v60  ;;  %v2778_v60 = vld [vmem:[%s4147_s3 + $0x38] sm:$0xff]  }
 0x58b   : > { %v2908_v18 = vpop.eup %2907  ;;  %2927 = vpow2.f32 %v2010_v20 }
 0x58c   : > { %v2014_v11 = vadd.f32 %v2904_v14, %v2013_v21  ;;  %v2910_v3 = vpop.eup %2909 }
 0x58d   : > { %v2912_v41 = vpop.eup %2911 }
 0x58e   : > { %v2015_v39 = vadd.f32 %v2906_v4, %v2014_v11  ;;  %v2914_v30 = vpop.eup %2913  ;;  %v2777_v11 = vld [vmem:[%s4147_s3 + $0x30] sm:$0xff]  }
 0x58f   : > { %v2916_v13 = vpop.eup %2915 }
 0x590   : > { %v2016_v55 = vadd.f32 %v2908_v18, %v2015_v39  ;;  %v2918_v15 = vpop.eup %2917  ;;  %v3013_v39 = vmov 0  }
 0x591   : > { %v2920_v6 = vpop.eup %2919  ;;  %2770 = vset.pattern.permute.xlu1 %v3013_v39  ;;  %2769 = vset.pattern.permute.xlu0 %v3013_v39 }
 0x592   : > { %v2017_v40 = vadd.f32 %v2910_v3, %v2016_v55  ;;  %v2922_v61 = vpop.eup %2921  ;;  %2183 = vperm.xlu0 %2769, %v2177_v37  }
 0x593   : > { %v2924_v50 = vpop.eup %2923 }
 0x594   : > { %v2018_v44 = vadd.f32 %v2912_v41, %v2017_v40  ;;  %v2926_v62 = vpop.eup %2925 }
 0x595   : > { %v2928_v63 = vpop.eup %2927 }
 0x596   : > { %v2019_v45 = vadd.f32 %v2914_v30, %v2018_v44 }
 0x598   : > { %v2020_v36 = vadd.f32 %v2916_v13, %v2019_v45 }
 0x59a   : > { %v2021_v43 = vadd.f32 %v2918_v15, %v2020_v36 }
 0x59c   : > { %v2022_v17 = vadd.f32 %v2920_v6, %v2021_v43  ;;  %v2205_v43 = vld [vmem:[%s298_s16] sm:$0xff] }
 0x59e   : > { %v2023_v48 = vadd.f32 %v2922_v61, %v2022_v17 }
 0x5a0   : > { %v2024_v47 = vadd.f32 %v2924_v50, %v2023_v48  ;;  %v2208_v48 = vld [vmem:[%s298_s16 + $0x18] sm:$0xff] }
 0x5a2   : > { %v2025_v35 = vadd.f32 %v2926_v62, %v2024_v47 }
 0x5a4   : > { %v2026_v58 = vadd.f32 %v2928_v63, %v2025_v35  ;;  %v2206_v35 = vld [vmem:[%s298_s16 + $0x8] sm:$0xff] }
 0x5a6   : > { %v2027_v2 = vrot.slane %v2026_v58, 4 }
 0x5a8   : > { %v2028_v10 = vadd.f32 %v2027_v2, %v2026_v58 }
 0x5aa   : > { %v2029_v29 = vrot.slane %v2028_v10, 2 }
 0x5ac   : > { %v2030_v0 = vadd.f32 %v2029_v29, %v2028_v10 }
 0x5ae   : > { %v2031_v34 = vrot.slane %v2030_v0, 1 }
 0x5b0   : > { %v2032_v25 = vadd.f32 %v2031_v34, %v2030_v0 }
 0x5b2   : > { %2929 = vrcp.f32 %v2032_v25 }
 0x5bc   : > { %v2930_v8 = vpop.eup %2929 }
 0x5bd   : > { %v2034_v32 = vmul.f32 %v2930_v8, %v2898_v53  ;;  %v2035_v28 = vmul.f32 %v2930_v8, %v2900_v12  ;;  %v2036_v26 = vmul.f32 %v2930_v8, %v2902_v5  ;;  %v2037_v33 = vmul.f32 %v2930_v8, %v2904_v14  ;;  %v2050_v14 = vld [vmem:[%s3110_s11 + $0x38] sm:$0xff] }
 0x5be   : > { %v2038_v42 = vmul.f32 %v2930_v8, %v2906_v4  ;;  %v2039_v1 = vmul.f32 %v2930_v8, %v2908_v18  ;;  %v2040_v31 = vmul.f32 %v2930_v8, %v2910_v3  ;;  %v2041_v27 = vmul.f32 %v2930_v8, %v2912_v41  ;;  %v2178_v4 = vld [vmem:[%s4148_s4 + $0x8] sm:$0xff]  ;;  %v2180_v18 = vld [vmem:[%s4148_s4 + $0x18] sm:$0xff] }
 0x5bf   : > { %v2052_v51 = vpack.c.bf16 %v2035_v28, %v2034_v32  ;;  %v2053_v52 = vpack.c.bf16 %v2037_v33, %v2036_v26  ;;  %v2042_v38 = vmul.f32 %v2930_v8, %v2914_v30  ;;  %v2043_v23 = vmul.f32 %v2930_v8, %v2916_v13  ;;  %2188 = vperm.xlu1 %2770, %v2178_v4   ;;  %v2207_v13 = vld [vmem:[%s298_s16 + $0x10] sm:$0xff] }
 0x5c0   : > { %v2054_v49 = vpack.c.bf16 %v2039_v1, %v2038_v42  ;;  %v2055_v16 = vpack.c.bf16 %v2041_v27, %v2040_v31  ;;  %v2044_v9 = vmul.f32 %v2930_v8, %v2918_v15  ;;  %v2045_v22 = vmul.f32 %v2930_v8, %v2920_v6 }
 0x5c1   : > { %2664 = vmatpush3.bf16.msra.mxu0 %v2052_v51  ;;  %v2056_v24 = vpack.c.bf16 %v2043_v23, %v2042_v38  ;;  %v2046_v54 = vmul.f32 %v2930_v8, %v2922_v61  ;;  %v2047_v56 = vmul.f32 %v2930_v8, %v2924_v50  ;;  %v2048_v53 = vmul.f32 %v2930_v8, %v2926_v62 }
 0x5c2   : > { %2665 = vmatprep.subr.bf16.mxu0 %v4243_v7  ;;  %v2057_v12 = vpack.c.bf16 %v2045_v22, %v2044_v9  ;;  %v2049_v5 = vmul.f32 %v2930_v8, %v2928_v63  ;;  %v2051_v59 = vpack.c.bf16 %v2050_v14, %v2050_v14 }
 0x5c3   : > { %v2058_v19 = vpack.c.bf16 %v2047_v56, %v2046_v54 }
 0x5c4   : > { %v2059_v21 = vpack.c.bf16 %v2049_v5, %v2048_v53 }
 0x5c5   : > { %2666 = vmatpush3.bf16.msra.mxu0 %v2053_v52 }
 0x5c6   : > { %2667 = vmatprep.subr.bf16.mxu0 %v4243_v7 }
 0x5c9   : > { %2668 = vmatpush3.bf16.msra.mxu0 %v2054_v49 }
 0x5ca   : > { %2669 = vmatprep.subr.bf16.mxu0 %v4243_v7 }
 0x5cd   : > { %2670 = vmatpush3.bf16.msra.mxu0 %v2055_v16 }
 0x5ce   : > { %2671 = vmatprep.subr.bf16.mxu0 %v4243_v7 }
 0x5d1   : > { %2672 = vmatpush3.bf16.msra.mxu0 %v2056_v24 }
 0x5d2   : > { %2673 = vmatprep.subr.bf16.mxu0 %v4243_v7 }
 0x5d5   : > { %2674 = vmatpush3.bf16.msra.mxu0 %v2057_v12 }
 0x5d6   : > { %2675 = vmatprep.subr.bf16.mxu0 %v4243_v7 }
 0x5d9   : > { %2676 = vmatpush3.bf16.msra.mxu0 %v2058_v19 }
 0x5da   : > { %2677 = vmatprep.subr.bf16.mxu0 %v4243_v7  ;;  %v2179_v7 = vld [vmem:[%s4148_s4 + $0x10] sm:$0xff] }
 0x5db   : > { %2193 = vperm.xlu1 %2770, %v2179_v7  }
 0x5dd   : > { %2678 = vmatpush3.bf16.msra.mxu0 %v2059_v21 }
 0x5df   : > { %2198 = vperm.xlu1 %2770, %v2180_v18  }
 0x5e0   : > { %2680 = vmatmul.mubr.bf16.vlgmr.msra.gmra.mrb[36].mxu0 %v2051_v59 }
 0x5e1   : > { %2685 = vmatprep.mubr.msk.bf16.mxu0 %vm4311_vm10, %v2777_v11 }
 0x611   : > { %v2184_v20 = vpop.permute.xlu0 %2183 }
 0x63e   : > { %v2189_v44 = vpop.permute.xlu1 %2188 }
 0x65a   : > { %v2194_v30 = vpop.permute.xlu1 %2193 }
 0x65e   : > { %v2199_v17 = vpop.permute.xlu1 %2198 }
 0x6b3   : > { %v2094_v46 = vpop.f32.mrb[36].mxu0 }
 0x6b4   : > { %v2104_v55 = vpack.c.bf16 %v2094_v46, %v2094_v46  ;;  %v2681_v3 = vpop.f32.mrb[37].mxu0 }
 0x6b5   : > { %v2097_v57 = vpop.f32.mrb[38].mxu0 }
 0x6b6   : > { %v2122_v40 = vsel %vm4312_vm13, %v2104_v55, 0  ;;  %2708 = vmatprep.subr.msk.bf16.mxu0 %vm4313_vm2, %v2104_v55  ;;  %v2682_v41 = vpop.f32.mrb[39].mxu0 }
 0x6b7   : > { %2684 = vmatpush3.bf16.msra.mxu0 %v2122_v40 }
 0x6ba   : > { %2686 = vmatmul.mubr.msk.bf16.vlgmr.msra.gmra.mrb[16].mxu0 %vm4314_vm12, %v2778_v60 }
 0x78d   : > { %v2687_v45 = vpop.f32.mrb[16].mxu0 }
 0x78e   : > { %v2203_v36 = vadd.f32 %v2687_v45, %v2194_v30  ;;  %v2158_v15 = vpop.f32.mrb[17].mxu0 }
 0x78f   : > { %v2201_v6 = vadd.f32 %v2184_v20, %v2158_v15  ;;  %v2688_v61 = vpop.f32.mrb[18].mxu0 }
 0x790   : > { %v2211_v50 = vadd.f32 %v2207_v13, %v2203_v36  ;;  %v2204_v47 = vadd.f32 %v2688_v61, %v2199_v17  ;;  %v2161_v62 = vpop.f32.mrb[19].mxu0 }
 0x791   : > { %v2209_v63 = vadd.f32 %v2205_v43, %v2201_v6  ;;  %v2202_v58 = vadd.f32 %v2189_v44, %v2161_v62 }
 0x792   : > { %2215 = vst [vmem:[%s277_s24 + $0x10] sm:$0xff] %v2211_v50  ;;  %v2212_v2 = vadd.f32 %v2208_v48, %v2204_v47 }
 0x793   : > { %2213 = vst [vmem:[%s277_s24] sm:$0xff] %v2209_v63  ;;  %v2210_v10 = vadd.f32 %v2206_v35, %v2202_v58 }
 0x794   : > { %2216 = vst [vmem:[%s277_s24 + $0x18] sm:$0xff] %v2212_v2 }
 0x795   : > { %2214 = vst [vmem:[%s277_s24 + $0x8] sm:$0xff] %v2210_v10 }
 0x796   : > { %2944 = shalt.err (!%p2941_p5)
}
 0x797   : > { %s2945_s13 = scalar_lea.hbm %s4094_s29, 512  ;;  %s2949_s16 = scalar_lea.hbm %s4149_s5, 1024 }
 0x798   : > { %p2946_p6 = scmp.ne.s32.totalorder %s4094_s29, %s2945_s13  ;;  %p2950_p10 = scmp.lt.u32.totalorder %s4094_s29, %s4149_s5 }
 0x799   : > { %p2951_p11 = scmp.lt.u32.totalorder %s2949_s16, %s2945_s13  ;;  %p2953_p13 = scmp.lt.u32.totalorder %s2945_s13, %s4094_s29 }
 0x79a   : > { %p2947_p7 = pnand %p2946_p6, %p3087_p4 }
 0x79b   : > { %p2952_p12 = por %p2951_p11, %p2950_p10 }
 0x79c   : > { %p2948_p9 = pneg %p2947_p7 }
 0x79d   : > { %p2954_p0 = por %p2953_p13, %p2952_p12 }
 0x79f   : > { %p2955_p1 = pnand %p2954_p0, %p2948_p9 }
 0x7a1   : > { %2958 = shalt.err (!%p2955_p1)
}
 0x7a2   : > { %s3015_s7 = smov 128   ;;  %s3016_s11 = smov 8  }
 0x7a3   : > { %2709 = dma.vmem_to_hbm [thread:$0]  (%p3087_p4), %s4089_s25, 512, %s4094_s29, %s4098_s21, %s3015_s7, %s3015_s7, %s3016_s11  }
 0x7a4 PF: > { %p2715_p2 = scmp.ge.s32.totalorder %s3009_s23, 2  ;;  %s2247_s27 = sand.u32 1, %s2989_s18  }
 0x7a5   : > { %s2248_s8 = scalar_lea.sflag [#allocation3], %s2247_s27 }
 0x7a6   : > { %p2712_p3 = pnand %p2715_p2, %p3094_p8 }
 0x7a8   : > { %2984 = dma.done.wait (!%p2712_p3), %s2248_s8, 512  }
 0x7a9   : > { %2986 = vsyncadd (!%p2712_p3), %s2248_s8, 4294966784  ;;  %s18_s23 = sadd.s32 1, %s3009_s23   ;;  %s4315_s18 = smov %s2993_s19 }
 0x7aa   : > { %p15_p5 = scmp.ge.s32.totalorder %s18_s23, 4   ;;  %s4316_s19 = smov %s2997_s20 }
 0x7ab   : > { %s4317_s20 = smov %s3100_s6  ;;  %s4318_s21 = smov %s3005_s22 }
 0x7ac   : > { %s4319_s22 = smov %s4321_s26  ;;  %17 = sbr.rel (!%p15_p5) target bundleno = 4 (0x4), region = 81 }
 0x7b3   :  { %2253 = vsyncpa [#allocation3], 1 }
 0x7b4   :  { %2255 = vsyncpa [#allocation3 + $0x1], 1 }

</bundles_post_ra>
